<compile_context>
chip_gen: v6e
topology: v6e:2x2x1
jax: 0.10.0
libtpu: 0.0.40
codegen_flags: <defaults>
</compile_context>

<pallas_src>
import jax
import jax.numpy as jnp
from jax.experimental import pallas as pl
from jax.experimental.pallas import tpu as pltpu


def _roundup(n, m):
    return ((n + m - 1) // m) * m


def identity_mxu_kernel(x_ref, wbig_ref, bconv_ref, fcw_ref, fcb_ref, o_ref):
    # x_ref:     (TB, S*D)  input tile (f32/bf16), rows fully lane-dense
    # wbig_ref:  (S*D, S)   block-diag-expanded conv1 weight, x dtype (VMEM, whole array)
    # bconv_ref: (1, 1)     conv1 bias, f32 (SMEM)
    # fcw_ref:   (S, OUT)   fc1 weight, pre-transposed, f32 (VMEM, whole array)
    # fcb_ref:   (1, OUT)   fc1 bias, f32 (VMEM, whole array)
    # o_ref:     (TB, OUT)  output tile, f32
    # conv1 (+bias, ReLU) on the MXU; h lands directly in (TB, S) lane-major layout.
    h = jnp.dot(x_ref[...], wbig_ref[...], preferred_element_type=jnp.float32)
    h = jnp.maximum(h + bconv_ref[0, 0], 0.0)                          # (TB, S)
    # fc1 (+bias, ReLU) on the MXU, f32 accumulate.
    out = jnp.dot(h, fcw_ref[...], preferred_element_type=jnp.float32) + fcb_ref[...]
    o_ref[...] = jnp.maximum(out, 0.0).astype(o_ref.dtype)


def identity_vpu_kernel(x_ref, wconv_ref, bconv_ref, fcw_ref, fcb_ref, o_ref):
    # Fallback for large SEQ_LEN (expanded conv weight would not fit VMEM):
    # conv1 = VPU multiply (input dtype) + cross-lane reduce accumulating in f32.
    # No full-tile f32 upcast of x.
    x = x_ref[...]                                                     # (TB, S, D)
    prod = (x * wconv_ref[...]).astype(jnp.float32)                    # fused per-vreg
    h = jnp.maximum(jnp.sum(prod, axis=-1) + bconv_ref[0, 0], 0.0)     # (TB, S)
    out = jnp.dot(h, fcw_ref[...], preferred_element_type=jnp.float32) + fcb_ref[...]
    o_ref[...] = jnp.maximum(out, 0.0).astype(o_ref.dtype)


def _pick_block_b(B, row_bytes, *, per_buffer_budget=6 << 20, min_grid=4):
    """Batch tile: biggest block whose (padded) x buffer fits ~6 MiB, but small
    enough that the grid has >= min_grid steps (v7x megacore + pipeline overlap)."""
    tb = max(1, per_buffer_budget // max(1, row_bytes))   # VMEM-driven cap (per buffer)
    tb = min(tb, -(-B // min_grid))                       # keep >= min_grid grid steps
    if tb >= B:
        return B
    tb = max(8, (tb // 8) * 8)                            # out-block 2nd-minor: 8-aligned or == B
    return min(tb, B)


def identity_forward(x, conv_w, conv_b, fc_w, fc_b, *, block_b=None, conv_on_mxu=None):
    """x: (B, S, D) f32/bf16; conv_w: (1,1,1,D); conv_b: (1,); fc_w: (OUT, S); fc_b: (OUT,)."""
    B, S, D = x.shape
    OUT = fc_w.shape[0]
    itemsize = x.dtype.itemsize

    bconv = conv_b.reshape(1, 1).astype(jnp.float32)            # SMEM scalar
    fcw_t = fc_w.T.astype(jnp.float32)                          # (S, OUT)
    fcb = fc_b.reshape(1, OUT).astype(jnp.float32)

    # Decide conv path: MXU (block-diag expanded weight) when that weight is small.
    wbig_vmem_bytes = _roundup(S * D, 8) * _roundup(S, 128) * itemsize
    if conv_on_mxu is None:
        conv_on_mxu = wbig_vmem_bytes <= (4 << 20)
    # TODO(synk): real scbert SEQ_LEN (~16k) needs an S-tiled grid (fc weight and the
    # expanded conv weight no longer fit whole in VMEM); not needed for these shapes.

    if conv_on_mxu:
        x_in = x.reshape(B, S * D)                              # free contiguous reshape in HBM
        w_f32 = conv_w.reshape(D).astype(jnp.float32)
        eye = jnp.eye(S, dtype=jnp.float32)
        # Wbig[s*D + d, s'] = w[d] * (s == s')  -> h = x2d @ Wbig gives h[b, s] directly.
        conv_operand = (eye[:, None, :] * w_f32[None, :, None]).reshape(S * D, S).astype(x.dtype)
        row_bytes = _roundup(S * D, 128) * itemsize             # per batch-row VMEM bytes
        conv_weight_vmem = wbig_vmem_bytes
        kernel = identity_mxu_kernel
        flops_conv = 2 * B * (S * D) * S                        # padded/expanded MXU work
    else:
        x_in = x
        conv_operand = conv_w.reshape(1, D).astype(x.dtype)     # lane-major conv weight
        row_bytes = _roundup(S, 8) * _roundup(D, 128) * itemsize
        conv_weight_vmem = _roundup(1, 8) * _roundup(D, 128) * itemsize
        kernel = identity_vpu_kernel
        flops_conv = 2 * B * S * D

    if block_b is None:
        block_b = _pick_block_b(B, row_bytes)
    grid = (pl.cdiv(B, block_b),)

    # Honest VMEM accounting (lane/sublane padding, double buffering) -> explicit limit.
    x_block_vmem = _roundup(block_b, 8) * row_bytes
    out_block_vmem = _roundup(block_b, 8) * _roundup(OUT, 128) * 4
    weights_vmem = (conv_weight_vmem
                    + _roundup(S, 8) * _roundup(OUT, 128) * 4    # fc weight
                    + 8 * _roundup(OUT, 128) * 4)                # fc bias
    vmem_need = 2 * (x_block_vmem + out_block_vmem) + weights_vmem
    vmem_limit = int(min(max(3 * vmem_need, 16 << 20), 48 << 20))  # 3x headroom, <= v7x physical

    flops = flops_conv + 2 * B * S * OUT
    bytes_accessed = (B * S * D * itemsize        # x (dominant)
                      + weights_vmem              # weights / biases
                      + B * OUT * 4)              # output

    vmem_whole = pl.BlockSpec(memory_space=pltpu.MemorySpace.VMEM)
    smem_whole = pl.BlockSpec(memory_space=pltpu.MemorySpace.SMEM)
    if conv_on_mxu:
        x_spec = pl.BlockSpec((block_b, S * D), lambda b: (b, 0))
    else:
        x_spec = pl.BlockSpec((block_b, S, D), lambda b: (b, 0, 0))

    return pl.pallas_call(
        kernel,
        out_shape=jax.ShapeDtypeStruct((B, OUT), jnp.float32),
        grid=grid,
        in_specs=[
            x_spec,        # x, batch-tiled, double-buffered
            vmem_whole,    # conv weight (Wbig or lane-major row)
            smem_whole,    # conv bias (scalar)
            vmem_whole,    # fc weight
            vmem_whole,    # fc bias
        ],
        out_specs=pl.BlockSpec((block_b, OUT), lambda b: (b, 0)),
        compiler_params=pltpu.CompilerParams(
            dimension_semantics=("parallel",),
            vmem_limit_bytes=vmem_limit),
        cost_estimate=pl.CostEstimate(
            flops=flops, transcendentals=0, bytes_accessed=bytes_accessed),
    )(x_in, conv_operand, bconv, fcw_t, fcb)


def reference_forward(x, conv_w, conv_b, fc_w, fc_b):
    # pure-JAX reference matching PyTorch semantics
    h = jnp.einsum("bsd,d->bs", x.astype(jnp.float32),
                   conv_w.reshape(-1).astype(jnp.float32)) + conv_b[0]
    h = jnp.maximum(h, 0.0)
    out = h @ fc_w.T.astype(jnp.float32) + fc_b
    return jnp.maximum(out, 0.0)


if __name__ == "__main__":
    # SEQ_LEN = gene_num + 1 = 16, embed = 200 (Conv2d kernel width), out_dim = 10
    S, D, OUT = 16, 200, 10
    key = jax.random.PRNGKey(0)
    k_x, k_cw, k_cb, k_fw, k_fb, k_x2, k_x3 = jax.random.split(key, 7)

    conv_w = jax.random.normal(k_cw, (1, 1, 1, D), dtype=jnp.float32) * 0.05  # Conv2d(1,1,(1,200)).weight
    conv_b = jax.random.normal(k_cb, (1,), dtype=jnp.float32) * 0.05          # Conv2d bias
    fc_w = jax.random.normal(k_fw, (OUT, S), dtype=jnp.float32) * 0.1         # Linear(SEQ_LEN, out_dim).weight
    fc_b = jax.random.normal(k_fb, (OUT,), dtype=jnp.float32) * 0.1           # Linear bias

    # 1) tiny batch, f32, MXU-conv path (B=2 cannot be split further -> grid=1)
    x = jax.random.normal(k_x, (2, S, D), dtype=jnp.float32)
    out = jax.block_until_ready(identity_forward(x, conv_w, conv_b, fc_w, fc_b))
    ref = reference_forward(x, conv_w, conv_b, fc_w, fc_b)
    assert out.shape == (2, OUT)
    assert jnp.allclose(out, ref, atol=2e-2, rtol=2e-2), "mismatch vs reference (f32, tiny)"

    # 2) larger batch, bf16 input (halves dominant HBM traffic), auto block_b -> grid >= 4
    xb = jax.random.normal(k_x2, (64, S, D), dtype=jnp.float32).astype(jnp.bfloat16)
    outb = jax.block_until_ready(identity_forward(xb, conv_w, conv_b, fc_w, fc_b))
    refb = reference_forward(xb.astype(jnp.float32), conv_w, conv_b, fc_w, fc_b)
    assert jnp.allclose(outb, refb, atol=5e-2, rtol=5e-2), "mismatch vs reference (bf16, gridded)"

    # 3) non-divisible batch: exercises masking of the partial last output block
    x3 = jax.random.normal(k_x3, (10, S, D), dtype=jnp.float32)
    out3 = jax.block_until_ready(identity_forward(x3, conv_w, conv_b, fc_w, fc_b, block_b=8))
    ref3 = reference_forward(x3, conv_w, conv_b, fc_w, fc_b)
    assert jnp.allclose(out3, ref3, atol=2e-2, rtol=2e-2), "mismatch vs reference (partial block)"

    # 4) VPU/XLU-reduce fallback path (used when SEQ_LEN is too large for the expanded weight)
    out4 = jax.block_until_ready(identity_forward(xb, conv_w, conv_b, fc_w, fc_b, conv_on_mxu=False))
    assert jnp.allclose(out4, refb, atol=5e-2, rtol=5e-2), "mismatch vs reference (VPU fallback)"

    print("KERNEL_OK")
</pallas_src>

<mosaic_0001>
module attributes {stable_mosaic.version = 11 : i64} {
  func.func @identity_mxu_kernel(%arg0: i32, %arg1: memref<2x3200xf32, #tpu.memory_space<vmem>>, %arg2: memref<3200x16xf32, #tpu.memory_space<vmem>>, %arg3: memref<1x1xf32, #tpu.memory_space<smem>>, %arg4: memref<16x10xf32, #tpu.memory_space<vmem>>, %arg5: memref<1x10xf32, #tpu.memory_space<vmem>>, %arg6: memref<2x10xf32, #tpu.memory_space<vmem>>) attributes {dimension_semantics = [#tpu.dimension_semantics<parallel>], iteration_bounds = array<i64: 1>, scalar_prefetch = 0 : i64, scratch_operands = 0 : i64, tpu.core_type = #tpu.core_type<tc>, window_params = [{transform_indices = @transform_0, window_bounds = array<i64: 2, 3200>}, {pipeline_mode = #tpu.pipeline_mode<synchronous>, transform_indices = @transform_1, window_bounds = array<i64: 3200, 16>}, {transform_indices = @transform_2, window_bounds = array<i64: 1, 1>}, {pipeline_mode = #tpu.pipeline_mode<synchronous>, transform_indices = @transform_3, window_bounds = array<i64: 16, 10>}, {pipeline_mode = #tpu.pipeline_mode<synchronous>, transform_indices = @transform_4, window_bounds = array<i64: 1, 10>}, {transform_indices = @transform_5, window_bounds = array<i64: 2, 10>}]} {
    %c0 = arith.constant 0 : index
    %c0_0 = arith.constant 0 : index
    %0 = vector.load %arg1[%c0, %c0_0] : memref<2x3200xf32, #tpu.memory_space<vmem>>, vector<2x3200xf32>
    %c0_1 = arith.constant 0 : index
    %c0_2 = arith.constant 0 : index
    %1 = vector.load %arg2[%c0_1, %c0_2] : memref<3200x16xf32, #tpu.memory_space<vmem>>, vector<3200x16xf32>
    %cst = arith.constant dense<0.000000e+00> : vector<2x16xf32>
    %2 = tpu.matmul %0, %1, %cst {dimension_numbers = #tpu.dot_dimension_numbers<[1], [0], [0], [1], [0, 0, 1, 1], [], []>} : vector<2x3200xf32>, vector<3200x16xf32>, vector<2x16xf32> -> vector<2x16xf32>
    %c0_3 = arith.constant 0 : index
    %c0_4 = arith.constant 0 : index
    %3 = memref.load %arg3[%c0_3, %c0_4] : memref<1x1xf32, #tpu.memory_space<smem>>
    %4 = vector.broadcast %3 : f32 to vector<2x16xf32>
    %5 = arith.addf %2, %4 : vector<2x16xf32>
    %cst_5 = arith.constant 0.000000e+00 : f32
    %6 = vector.broadcast %cst_5 : f32 to vector<2x16xf32>
    %7 = arith.maximumf %5, %6 : vector<2x16xf32>
    %c0_6 = arith.constant 0 : index
    %c0_7 = arith.constant 0 : index
    %8 = vector.load %arg4[%c0_6, %c0_7] : memref<16x10xf32, #tpu.memory_space<vmem>>, vector<16x10xf32>
    %cst_8 = arith.constant dense<0.000000e+00> : vector<2x10xf32>
    %9 = tpu.matmul %7, %8, %cst_8 {dimension_numbers = #tpu.dot_dimension_numbers<[1], [0], [0], [1], [0, 0, 1, 1], [], []>} : vector<2x16xf32>, vector<16x10xf32>, vector<2x10xf32> -> vector<2x10xf32>
    %c0_9 = arith.constant 0 : index
    %c0_10 = arith.constant 0 : index
    %10 = vector.load %arg5[%c0_9, %c0_10] : memref<1x10xf32, #tpu.memory_space<vmem>>, vector<1x10xf32>
    %11 = vector.broadcast %10 : vector<1x10xf32> to vector<2x10xf32>
    %12 = arith.addf %9, %11 : vector<2x10xf32>
    %cst_11 = arith.constant 0.000000e+00 : f32
    %13 = vector.broadcast %cst_11 : f32 to vector<2x10xf32>
    %14 = arith.maximumf %12, %13 : vector<2x10xf32>
    %c0_12 = arith.constant 0 : index
    %c0_13 = arith.constant 0 : index
    %15 = vector.load %arg6[%c0_12, %c0_13] : memref<2x10xf32, #tpu.memory_space<vmem>>, vector<2x10xf32>
    tpu.vector_store %arg6[%c0_12, %c0_13], %14 {strides = array<i32>} : memref<2x10xf32, #tpu.memory_space<vmem>>, vector<2x10xf32>,
    return
  }
  func.func @transform_0(%arg0: i32) -> (i32, i32) {
    %c0_i32 = arith.constant 0 : i32
    %c0_i32_0 = arith.constant 0 : i32
    return %arg0, %c0_i32 : i32, i32
  }
  func.func @transform_1(%arg0: i32) -> (i32, i32) {
    %c0_i32 = arith.constant 0 : i32
    %c0_i32_0 = arith.constant 0 : i32
    %c0_i32_1 = arith.constant 0 : i32
    return %c0_i32, %c0_i32_0 : i32, i32
  }
  func.func @transform_2(%arg0: i32) -> (i32, i32) {
    %c0_i32 = arith.constant 0 : i32
    %c0_i32_0 = arith.constant 0 : i32
    %c0_i32_1 = arith.constant 0 : i32
    return %c0_i32, %c0_i32_0 : i32, i32
  }
  func.func @transform_3(%arg0: i32) -> (i32, i32) {
    %c0_i32 = arith.constant 0 : i32
    %c0_i32_0 = arith.constant 0 : i32
    %c0_i32_1 = arith.constant 0 : i32
    return %c0_i32, %c0_i32_0 : i32, i32
  }
  func.func @transform_4(%arg0: i32) -> (i32, i32) {
    %c0_i32 = arith.constant 0 : i32
    %c0_i32_0 = arith.constant 0 : i32
    %c0_i32_1 = arith.constant 0 : i32
    return %c0_i32, %c0_i32_0 : i32, i32
  }
  func.func @transform_5(%arg0: i32) -> (i32, i32) {
    %c0_i32 = arith.constant 0 : i32
    %c0_i32_0 = arith.constant 0 : i32
    return %arg0, %c0_i32 : i32, i32
  }
}

</mosaic_0001>

<bundles_post_ra>
// kernel: tpu_custom_call.1
= control target key start
LH: loop header
LB: loop body
LE: loop exit
PB: predicated region body
PF: predicated region fallthrough
CT: control target
= control target key end

     0   :  { %v2100_v27 = vmov 1983009808   ;;  %v442_v29 = vlaneseq  ;;  %s3384_s0 = inlined_call_operand.vmem [shape: f32[2,3200], index: 0, kind: input, shape index: {}]   ;;  %s3385_s1 = inlined_call_operand.vmem [shape: f32[3200,16], index: 1, kind: input, shape index: {}]   ;;  %s3386_s2 = inlined_call_operand.<no memory space> [shape: f32[1,1], index: 2, kind: input, shape index: {}]   ;;  %s3387_s3 = inlined_call_operand.vmem [shape: f32[16,10], index: 3, kind: input, shape index: {}]   ;;  %s3388_s4 = inlined_call_operand.vmem [shape: f32[1,10], index: 4, kind: input, shape index: {}]   ;;  %s3389_s5 = inlined_call_operand.hbm [shape: f32[2,10], index: 5, kind: output, shape index: {}]  }
   0x1   :  { %v60_v0 = vld [vmem:[%s3385_s1 + $0xf8] sm:$0xff]  ;;  %v59_v2 = vld [vmem:[%s3385_s1 + $0xf0] sm:$0xff]  ;;  %v58_v6 = vld [vmem:[%s3385_s1 + $0xe8] sm:$0xff]  ;;  %v440_v28 = vunpack.c.l.s4 %v2100_v27 }
   0x2   :  { %v44_v1 = vld [vmem:[%s3385_s1 + $0x78] sm:$0xff]  ;;  %1586 = vmatprep.subr.mxu0 %v60_v0  ;;  %v43_v4 = vld [vmem:[%s3385_s1 + $0x70] sm:$0xff]  ;;  %v42_v8 = vld [vmem:[%s3385_s1 + $0x68] sm:$0xff]  ;;  %v443_v39 = vshrl.u32 %v442_v29, 7 }
   0x3   :  { %v92_v3 = vld [vmem:[%s3385_s1 + $0x1f8] sm:$0xff]  ;;  %1587 = vmatpush3.msra.mxu0 %v44_v1  ;;  %v91_v7 = vld [vmem:[%s3385_s1 + $0x1f0] sm:$0xff]  ;;  %v90_v10 = vld [vmem:[%s3385_s1 + $0x1e8] sm:$0xff]  ;;  %v441_v38 = vunpack.c.0.s8 %v440_v28 }
   0x4   :  { %v76_v5 = vld [vmem:[%s3385_s1 + $0x178] sm:$0xff]  ;;  %1621 = vmatprep.subr.mxu1 %v92_v3  ;;  %1588 = vmatprep.subr.mxu0 %v59_v2  ;;  %v75_v9 = vld [vmem:[%s3385_s1 + $0x170] sm:$0xff]  ;;  %v57_v11 = vld [vmem:[%s3385_s1 + $0xe0] sm:$0xff] }
   0x5   :  { %1622 = vmatpush3.msra.mxu1 %v76_v5  ;;  %1589 = vmatpush3.msra.mxu0 %v43_v4  ;;  %v74_v12 = vld [vmem:[%s3385_s1 + $0x168] sm:$0xff]  ;;  %v41_v13 = vld [vmem:[%s3385_s1 + $0x60] sm:$0xff]  ;;  %v56_v15 = vld [vmem:[%s3385_s1 + $0xd8] sm:$0xff]  ;;  %v2263_v48 = vsub.s32 %v441_v38, %v443_v39 }
   0x6   :  { %1623 = vmatprep.subr.mxu1 %v91_v7  ;;  %1590 = vmatprep.subr.mxu0 %v58_v6  ;;  %v89_v14 = vld [vmem:[%s3385_s1 + $0x1e0] sm:$0xff]  ;;  %v40_v17 = vld [vmem:[%s3385_s1 + $0x58] sm:$0xff]  ;;  %v55_v19 = vld [vmem:[%s3385_s1 + $0xd0] sm:$0xff] }
   0x7   :  { %1624 = vmatpush3.msra.mxu1 %v75_v9  ;;  %1591 = vmatpush3.msra.mxu0 %v42_v8  ;;  %v73_v16 = vld [vmem:[%s3385_s1 + $0x160] sm:$0xff]  ;;  %v88_v18 = vld [vmem:[%s3385_s1 + $0x1d8] sm:$0xff]  ;;  %v39_v21 = vld [vmem:[%s3385_s1 + $0x50] sm:$0xff] }
   0x8   :  { %1625 = vmatprep.subr.mxu1 %v90_v10  ;;  %1592 = vmatprep.subr.mxu0 %v57_v11  ;;  %v72_v20 = vld [vmem:[%s3385_s1 + $0x158] sm:$0xff]  ;;  %v87_v22 = vld [vmem:[%s3385_s1 + $0x1d0] sm:$0xff]  ;;  %v54_v23 = vld [vmem:[%s3385_s1 + $0xc8] sm:$0xff] }
   0x9   :  { %1626 = vmatpush3.msra.mxu1 %v74_v12  ;;  %1593 = vmatpush3.msra.mxu0 %v41_v13  ;;  %v71_v24 = vld [vmem:[%s3385_s1 + $0x150] sm:$0xff]  ;;  %v38_v25 = vld [vmem:[%s3385_s1 + $0x48] sm:$0xff]  ;;  %v53_v30 = vld [vmem:[%s3385_s1 + $0xc0] sm:$0xff] }
   0xa   :  { %1627 = vmatprep.subr.mxu1 %v89_v14  ;;  %1594 = vmatprep.subr.mxu0 %v56_v15  ;;  %v86_v26 = vld [vmem:[%s3385_s1 + $0x1c8] sm:$0xff]  ;;  %v37_v32 = vld [vmem:[%s3385_s1 + $0x40] sm:$0xff]  ;;  %v52_v34 = vld [vmem:[%s3385_s1 + $0xb8] sm:$0xff] }
   0xb   :  { %1628 = vmatpush3.msra.mxu1 %v73_v16  ;;  %1595 = vmatpush3.msra.mxu0 %v40_v17  ;;  %v70_v31 = vld [vmem:[%s3385_s1 + $0x148] sm:$0xff]  ;;  %v85_v33 = vld [vmem:[%s3385_s1 + $0x1c0] sm:$0xff]  ;;  %v36_v36 = vld [vmem:[%s3385_s1 + $0x38] sm:$0xff] }
   0xc   :  { %1629 = vmatprep.subr.mxu1 %v88_v18  ;;  %1596 = vmatprep.subr.mxu0 %v55_v19  ;;  %v69_v35 = vld [vmem:[%s3385_s1 + $0x140] sm:$0xff]  ;;  %v84_v37 = vld [vmem:[%s3385_s1 + $0x1b8] sm:$0xff]  ;;  %v51_v40 = vld [vmem:[%s3385_s1 + $0xb0] sm:$0xff] }
   0xd   :  { %1630 = vmatpush3.msra.mxu1 %v72_v20  ;;  %1597 = vmatpush3.msra.mxu0 %v39_v21  ;;  %v68_v41 = vld [vmem:[%s3385_s1 + $0x138] sm:$0xff]  ;;  %v35_v42 = vld [vmem:[%s3385_s1 + $0x30] sm:$0xff]  ;;  %v50_v44 = vld [vmem:[%s3385_s1 + $0xa8] sm:$0xff] }
   0xe   :  { %1631 = vmatprep.subr.mxu1 %v87_v22  ;;  %1598 = vmatprep.subr.mxu0 %v54_v23  ;;  %v83_v43 = vld [vmem:[%s3385_s1 + $0x1b0] sm:$0xff]  ;;  %v34_v46 = vld [vmem:[%s3385_s1 + $0x28] sm:$0xff]  ;;  %v49_v49 = vld [vmem:[%s3385_s1 + $0xa0] sm:$0xff] }
   0xf   :  { %1632 = vmatpush3.msra.mxu1 %v71_v24  ;;  %1599 = vmatpush3.msra.mxu0 %v38_v25  ;;  %v67_v45 = vld [vmem:[%s3385_s1 + $0x130] sm:$0xff]  ;;  %v82_v47 = vld [vmem:[%s3385_s1 + $0x1a8] sm:$0xff]  ;;  %v22_v51 = vld [vmem:[%s3384_s0] sm:$0xff] }
  0x10   :  { %1633 = vmatprep.subr.mxu1 %v86_v26  ;;  %1600 = vmatprep.subr.mxu0 %v53_v30  ;;  %v66_v50 = vld [vmem:[%s3385_s1 + $0x128] sm:$0xff]  ;;  %v33_v52 = vld [vmem:[%s3385_s1 + $0x20] sm:$0xff]  ;;  %v48_v54 = vld [vmem:[%s3385_s1 + $0x98] sm:$0xff]  ;;  %v445_v58 = vrot.slane %v22_v51, %v2263_v48  ;;  %v438_v59 = vcombine.high %v22_v51, %v22_v51 }
  0x11   :  { %1634 = vmatpush3.msra.mxu1 %v70_v31  ;;  %1601 = vmatpush3.msra.mxu0 %v37_v32  ;;  %v81_v53 = vld [vmem:[%s3385_s1 + $0x1a0] sm:$0xff]  ;;  %v32_v56 = vld [vmem:[%s3385_s1 + $0x18] sm:$0xff]  ;;  %v47_v60 = vld [vmem:[%s3385_s1 + $0x90] sm:$0xff] }
  0x12   :  { %1635 = vmatprep.subr.mxu1 %v85_v33  ;;  %1602 = vmatprep.subr.mxu0 %v52_v34  ;;  %v65_v55 = vld [vmem:[%s3385_s1 + $0x120] sm:$0xff]  ;;  %v80_v57 = vld [vmem:[%s3385_s1 + $0x198] sm:$0xff]  ;;  %v31_v62 = vld [vmem:[%s3385_s1 + $0x10] sm:$0xff]  ;;  %v453_v4 = vcombine.high %v445_v58, %v445_v58  ;;  %v452_v5 = vrot.slane %v438_v59, %v2263_v48 }
  0x13   :  { %1636 = vmatpush3.msra.mxu1 %v69_v35  ;;  %1603 = vmatpush3.msra.mxu0 %v36_v36  ;;  %v64_v61 = vld [vmem:[%s3385_s1 + $0x118] sm:$0xff]  ;;  %v79_v63 = vld [vmem:[%s3385_s1 + $0x190] sm:$0xff]  ;;  %v46_v0 = vld [vmem:[%s3385_s1 + $0x88] sm:$0xff] }
  0x14   :  { %1637 = vmatprep.subr.mxu1 %v84_v37  ;;  %1604 = vmatprep.subr.mxu0 %v51_v40  ;;  %v63_v1 = vld [vmem:[%s3385_s1 + $0x110] sm:$0xff]  ;;  %v30_v2 = vld [vmem:[%s3385_s1 + $0x8] sm:$0xff]  ;;  %v45_v6 = vld [vmem:[%s3385_s1 + $0x80] sm:$0xff]  ;;  %v454_v12 = vcombine.high %v452_v5, %v452_v5 }
  0x15   :  { %1638 = vmatpush3.msra.mxu1 %v68_v41  ;;  %1605 = vmatpush3.msra.mxu0 %v35_v42  ;;  %v78_v3 = vld [vmem:[%s3385_s1 + $0x188] sm:$0xff]  ;;  %v29_v7 = vld [vmem:[%s3385_s1] sm:$0xff]  ;;  %v124_v10 = vld [vmem:[%s3385_s1 + $0x2f8] sm:$0xff] }
  0x16   :  { %1639 = vmatprep.subr.mxu1 %v83_v43  ;;  %1606 = vmatprep.subr.mxu0 %v50_v44  ;;  %v62_v8 = vld [vmem:[%s3385_s1 + $0x108] sm:$0xff]  ;;  %v77_v9 = vld [vmem:[%s3385_s1 + $0x180] sm:$0xff]  ;;  %v108_v13 = vld [vmem:[%s3385_s1 + $0x278] sm:$0xff] }
  0x17   :  { %1640 = vmatpush3.msra.mxu1 %v67_v45  ;;  %1607 = vmatpush3.msra.mxu0 %v34_v46  ;;  %v61_v11 = vld [vmem:[%s3385_s1 + $0x100] sm:$0xff]  ;;  %v123_v14 = vld [vmem:[%s3385_s1 + $0x2f0] sm:$0xff]  ;;  %v156_v15 = vld [vmem:[%s3385_s1 + $0x3f8] sm:$0xff] }
  0x18   :  { %1641 = vmatprep.subr.mxu1 %v82_v47  ;;  %1608 = vmatprep.subr.mxu0 %v49_v49  ;;  %v107_v16 = vld [vmem:[%s3385_s1 + $0x270] sm:$0xff]  ;;  %v140_v17 = vld [vmem:[%s3385_s1 + $0x378] sm:$0xff]  ;;  %v122_v18 = vld [vmem:[%s3385_s1 + $0x2e8] sm:$0xff] }
  0x19   :  { %1642 = vmatpush3.msra.mxu1 %v66_v50  ;;  %1609 = vmatpush3.msra.mxu0 %v33_v52  ;;  %v155_v19 = vld [vmem:[%s3385_s1 + $0x3f0] sm:$0xff]  ;;  %v106_v20 = vld [vmem:[%s3385_s1 + $0x268] sm:$0xff]  ;;  %v121_v22 = vld [vmem:[%s3385_s1 + $0x2e0] sm:$0xff] }
  0x1a   :  { %1643 = vmatprep.subr.mxu1 %v81_v53  ;;  %1610 = vmatprep.subr.mxu0 %v48_v54  ;;  %v139_v21 = vld [vmem:[%s3385_s1 + $0x370] sm:$0xff]  ;;  %v154_v23 = vld [vmem:[%s3385_s1 + $0x3e8] sm:$0xff]  ;;  %v105_v24 = vld [vmem:[%s3385_s1 + $0x260] sm:$0xff] }
  0x1b   :  { %1644 = vmatpush3.msra.mxu1 %v65_v55  ;;  %1611 = vmatpush3.msra.mxu0 %v32_v56  ;;  %v138_v25 = vld [vmem:[%s3385_s1 + $0x368] sm:$0xff]  ;;  %v120_v26 = vld [vmem:[%s3385_s1 + $0x2d8] sm:$0xff]  ;;  %v153_v27 = vld [vmem:[%s3385_s1 + $0x3e0] sm:$0xff] }
  0x1c   :  { %1645 = vmatprep.subr.mxu1 %v80_v57  ;;  %1612 = vmatprep.subr.mxu0 %v47_v60  ;;  %v104_v28 = vld [vmem:[%s3385_s1 + $0x258] sm:$0xff]  ;;  %v137_v29 = vld [vmem:[%s3385_s1 + $0x360] sm:$0xff]  ;;  %v119_v30 = vld [vmem:[%s3385_s1 + $0x2d0] sm:$0xff] }
  0x1d   :  { %1646 = vmatpush3.msra.mxu1 %v64_v61  ;;  %1613 = vmatpush3.msra.mxu0 %v31_v62  ;;  %v152_v31 = vld [vmem:[%s3385_s1 + $0x3d8] sm:$0xff]  ;;  %v103_v32 = vld [vmem:[%s3385_s1 + $0x250] sm:$0xff]  ;;  %v118_v34 = vld [vmem:[%s3385_s1 + $0x2c8] sm:$0xff] }
  0x1e   :  { %1647 = vmatprep.subr.mxu1 %v79_v63  ;;  %1614 = vmatprep.subr.mxu0 %v46_v0  ;;  %v136_v33 = vld [vmem:[%s3385_s1 + $0x358] sm:$0xff]  ;;  %v151_v35 = vld [vmem:[%s3385_s1 + $0x3d0] sm:$0xff]  ;;  %v102_v36 = vld [vmem:[%s3385_s1 + $0x248] sm:$0xff] }
  0x1f   :  { %1648 = vmatpush3.msra.mxu1 %v63_v1  ;;  %1615 = vmatpush3.msra.mxu0 %v30_v2  ;;  %v135_v37 = vld [vmem:[%s3385_s1 + $0x350] sm:$0xff]  ;;  %v117_v38 = vld [vmem:[%s3385_s1 + $0x2c0] sm:$0xff]  ;;  %v150_v39 = vld [vmem:[%s3385_s1 + $0x3c8] sm:$0xff] }
  0x20   :  { %1649 = vmatprep.subr.mxu1 %v78_v3  ;;  %1616 = vmatprep.subr.mxu0 %v45_v6  ;;  %v101_v40 = vld [vmem:[%s3385_s1 + $0x240] sm:$0xff]  ;;  %v134_v41 = vld [vmem:[%s3385_s1 + $0x348] sm:$0xff]  ;;  %v116_v42 = vld [vmem:[%s3385_s1 + $0x2b8] sm:$0xff] }
  0x21   :  { %636 = vmatprep.mubr.f32.mxu0 %v453_v4  ;;  %1617 = vmatpush3.msra.mxu0 %v29_v7  ;;  %v149_v43 = vld [vmem:[%s3385_s1 + $0x3c0] sm:$0xff]  ;;  %v100_v44 = vld [vmem:[%s3385_s1 + $0x238] sm:$0xff]  ;;  %v115_v46 = vld [vmem:[%s3385_s1 + $0x2b0] sm:$0xff] }
  0x22   :  { %1650 = vmatpush3.msra.mxu1 %v62_v8  ;;  %637 = vmatmul.mubr.f32.vlgmr.msra.gmra.mxu0 %v445_v58  ;;  %v133_v45 = vld [vmem:[%s3385_s1 + $0x340] sm:$0xff]  ;;  %v148_v47 = vld [vmem:[%s3385_s1 + $0x3b8] sm:$0xff]  ;;  %v99_v49 = vld [vmem:[%s3385_s1 + $0x230] sm:$0xff] }
  0x23   :  { %1651 = vmatprep.subr.mxu1 %v77_v9  ;;  %1656 = vmatprep.subr.mxu0 %v124_v10  ;;  %v132_v50 = vld [vmem:[%s3385_s1 + $0x338] sm:$0xff]  ;;  %v114_v51 = vld [vmem:[%s3385_s1 + $0x2a8] sm:$0xff]  ;;  %v147_v52 = vld [vmem:[%s3385_s1 + $0x3b0] sm:$0xff] }
  0x24   :  { %1652 = vmatpush3.msra.mxu1 %v61_v11  ;;  %706 = vmatprep.mubr.f32.mxu1 %v454_v12  ;;  %v98_v53 = vld [vmem:[%s3385_s1 + $0x228] sm:$0xff]  ;;  %v131_v54 = vld [vmem:[%s3385_s1 + $0x330] sm:$0xff]  ;;  %v113_v55 = vld [vmem:[%s3385_s1 + $0x2a0] sm:$0xff] }
  0x25   :  { %1657 = vmatpush3.msra.mxu0 %v108_v13  ;;  %707 = vmatmul.mubr.f32.vlgmr.msra.gmra.mxu1 %v452_v5  ;;  %v146_v56 = vld [vmem:[%s3385_s1 + $0x3a8] sm:$0xff]  ;;  %v97_v57 = vld [vmem:[%s3385_s1 + $0x220] sm:$0xff]  ;;  %v112_v60 = vld [vmem:[%s3385_s1 + $0x298] sm:$0xff] }
  0x26   :  { %1658 = vmatprep.subr.mxu0 %v123_v14  ;;  %1691 = vmatprep.subr.mxu1 %v156_v15  ;;  %v23_v58 = vld [vmem:[%s3384_s0 + $0x8] sm:$0xff]  ;;  %v145_v61 = vld [vmem:[%s3385_s1 + $0x3a0] sm:$0xff]  ;;  %v96_v62 = vld [vmem:[%s3385_s1 + $0x218] sm:$0xff] }
  0x27   :  { %1659 = vmatpush3.msra.mxu0 %v107_v16  ;;  %1692 = vmatpush3.msra.mxu1 %v140_v17  ;;  %v130_v59 = vld [vmem:[%s3385_s1 + $0x328] sm:$0xff]  ;;  %v129_v63 = vld [vmem:[%s3385_s1 + $0x320] sm:$0xff]  ;;  %v111_v0 = vld [vmem:[%s3385_s1 + $0x290] sm:$0xff]  ;;  %v455_v1 = vcombine.high %v23_v58, %v23_v58  ;;  %v462_v4 = vrot.slane %v23_v58, %v2263_v48 }
  0x28   :  { %1660 = vmatprep.subr.mxu0 %v122_v18  ;;  %1693 = vmatprep.subr.mxu1 %v155_v19  ;;  %v144_v2 = vld [vmem:[%s3385_s1 + $0x398] sm:$0xff]  ;;  %v95_v3 = vld [vmem:[%s3385_s1 + $0x210] sm:$0xff]  ;;  %v110_v6 = vld [vmem:[%s3385_s1 + $0x288] sm:$0xff] }
  0x29   :  { %1661 = vmatpush3.msra.mxu0 %v106_v20  ;;  %1694 = vmatpush3.msra.mxu1 %v139_v21  ;;  %v128_v5 = vld [vmem:[%s3385_s1 + $0x318] sm:$0xff]  ;;  %v143_v7 = vld [vmem:[%s3385_s1 + $0x390] sm:$0xff]  ;;  %v94_v8 = vld [vmem:[%s3385_s1 + $0x208] sm:$0xff]  ;;  %v469_v11 = vrot.slane %v455_v1, %v2263_v48  ;;  %v470_v14 = vcombine.high %v462_v4, %v462_v4 }
  0x2a   :  { %1662 = vmatprep.subr.mxu0 %v121_v22  ;;  %1695 = vmatprep.subr.mxu1 %v154_v23  ;;  %v127_v9 = vld [vmem:[%s3385_s1 + $0x310] sm:$0xff]  ;;  %v109_v10 = vld [vmem:[%s3385_s1 + $0x280] sm:$0xff]  ;;  %v142_v12 = vld [vmem:[%s3385_s1 + $0x388] sm:$0xff] }
  0x2b   :  { %1663 = vmatpush3.msra.mxu0 %v105_v24  ;;  %1696 = vmatpush3.msra.mxu1 %v138_v25  ;;  %v93_v13 = vld [vmem:[%s3385_s1 + $0x200] sm:$0xff]  ;;  %v126_v15 = vld [vmem:[%s3385_s1 + $0x308] sm:$0xff]  ;;  %v188_v17 = vld [vmem:[%s3385_s1 + $0x4f8] sm:$0xff]  ;;  %v471_v19 = vcombine.high %v469_v11, %v469_v11 }
  0x2c   :  { %1664 = vmatprep.subr.mxu0 %v120_v26  ;;  %1697 = vmatprep.subr.mxu1 %v153_v27  ;;  %v141_v16 = vld [vmem:[%s3385_s1 + $0x380] sm:$0xff]  ;;  %v172_v20 = vld [vmem:[%s3385_s1 + $0x478] sm:$0xff]  ;;  %v187_v21 = vld [vmem:[%s3385_s1 + $0x4f0] sm:$0xff] }
  0x2d   :  { %1665 = vmatpush3.msra.mxu0 %v104_v28  ;;  %1698 = vmatpush3.msra.mxu1 %v137_v29  ;;  %v125_v18 = vld [vmem:[%s3385_s1 + $0x300] sm:$0xff]  ;;  %v220_v22 = vld [vmem:[%s3385_s1 + $0x5f8] sm:$0xff]  ;;  %v171_v23 = vld [vmem:[%s3385_s1 + $0x470] sm:$0xff] }
  0x2e   :  { %1666 = vmatprep.subr.mxu0 %v119_v30  ;;  %1699 = vmatprep.subr.mxu1 %v152_v31  ;;  %v204_v24 = vld [vmem:[%s3385_s1 + $0x578] sm:$0xff]  ;;  %v186_v25 = vld [vmem:[%s3385_s1 + $0x4e8] sm:$0xff]  ;;  %v219_v26 = vld [vmem:[%s3385_s1 + $0x5f0] sm:$0xff] }
  0x2f   :  { %1667 = vmatpush3.msra.mxu0 %v103_v32  ;;  %1700 = vmatpush3.msra.mxu1 %v136_v33  ;;  %v170_v27 = vld [vmem:[%s3385_s1 + $0x468] sm:$0xff]  ;;  %v203_v28 = vld [vmem:[%s3385_s1 + $0x570] sm:$0xff]  ;;  %v185_v29 = vld [vmem:[%s3385_s1 + $0x4e0] sm:$0xff] }
  0x30   :  { %1668 = vmatprep.subr.mxu0 %v118_v34  ;;  %1701 = vmatprep.subr.mxu1 %v151_v35  ;;  %v218_v30 = vld [vmem:[%s3385_s1 + $0x5e8] sm:$0xff]  ;;  %v169_v31 = vld [vmem:[%s3385_s1 + $0x460] sm:$0xff]  ;;  %v184_v33 = vld [vmem:[%s3385_s1 + $0x4d8] sm:$0xff] }
  0x31   :  { %1669 = vmatpush3.msra.mxu0 %v102_v36  ;;  %1702 = vmatpush3.msra.mxu1 %v135_v37  ;;  %v202_v32 = vld [vmem:[%s3385_s1 + $0x568] sm:$0xff]  ;;  %v217_v34 = vld [vmem:[%s3385_s1 + $0x5e0] sm:$0xff]  ;;  %v168_v35 = vld [vmem:[%s3385_s1 + $0x458] sm:$0xff] }
  0x32   :  { %1670 = vmatprep.subr.mxu0 %v117_v38  ;;  %1703 = vmatprep.subr.mxu1 %v150_v39  ;;  %v201_v36 = vld [vmem:[%s3385_s1 + $0x560] sm:$0xff]  ;;  %v183_v37 = vld [vmem:[%s3385_s1 + $0x4d0] sm:$0xff]  ;;  %v216_v38 = vld [vmem:[%s3385_s1 + $0x5d8] sm:$0xff] }
  0x33   :  { %1671 = vmatpush3.msra.mxu0 %v101_v40  ;;  %1704 = vmatpush3.msra.mxu1 %v134_v41  ;;  %v167_v39 = vld [vmem:[%s3385_s1 + $0x450] sm:$0xff]  ;;  %v200_v40 = vld [vmem:[%s3385_s1 + $0x558] sm:$0xff]  ;;  %v182_v41 = vld [vmem:[%s3385_s1 + $0x4c8] sm:$0xff] }
  0x34   :  { %1672 = vmatprep.subr.mxu0 %v116_v42  ;;  %1705 = vmatprep.subr.mxu1 %v149_v43  ;;  %v215_v42 = vld [vmem:[%s3385_s1 + $0x5d0] sm:$0xff]  ;;  %v166_v43 = vld [vmem:[%s3385_s1 + $0x448] sm:$0xff] }
  0x35   :  { %1673 = vmatpush3.msra.mxu0 %v100_v44  ;;  %1706 = vmatpush3.msra.mxu1 %v133_v45  ;;  %v199_v44 = vld [vmem:[%s3385_s1 + $0x550] sm:$0xff]  ;;  %v181_v45 = vld [vmem:[%s3385_s1 + $0x4c0] sm:$0xff]  ;;  %v178_v58 = vld [vmem:[%s3385_s1 + $0x4a8] sm:$0xff] }
  0x36   :  { %1674 = vmatprep.subr.mxu0 %v115_v46  ;;  %1707 = vmatprep.subr.mxu1 %v148_v47  ;;  %v214_v46 = vld [vmem:[%s3385_s1 + $0x5c8] sm:$0xff]  ;;  %v165_v47 = vld [vmem:[%s3385_s1 + $0x440] sm:$0xff]  ;;  %v24_v1 = vld [vmem:[%s3384_s0 + $0x10] sm:$0xff] }
  0x37   :  { %1675 = vmatpush3.msra.mxu0 %v99_v49  ;;  %1708 = vmatpush3.msra.mxu1 %v132_v50  ;;  %v198_v49 = vld [vmem:[%s3385_s1 + $0x548] sm:$0xff]  ;;  %v180_v50 = vld [vmem:[%s3385_s1 + $0x4b8] sm:$0xff] }
  0x38   :  { %1676 = vmatprep.subr.mxu0 %v114_v51  ;;  %1709 = vmatprep.subr.mxu1 %v147_v52  ;;  %v213_v51 = vld [vmem:[%s3385_s1 + $0x5c0] sm:$0xff]  ;;  %v164_v52 = vld [vmem:[%s3385_s1 + $0x438] sm:$0xff] }
  0x39   :  { %1677 = vmatpush3.msra.mxu0 %v98_v53  ;;  %1710 = vmatpush3.msra.mxu1 %v131_v54  ;;  %v197_v53 = vld [vmem:[%s3385_s1 + $0x540] sm:$0xff]  ;;  %v179_v54 = vld [vmem:[%s3385_s1 + $0x4b0] sm:$0xff] }
  0x3a   :  { %1678 = vmatprep.subr.mxu0 %v113_v55  ;;  %1711 = vmatprep.subr.mxu1 %v146_v56  ;;  %v212_v55 = vld [vmem:[%s3385_s1 + $0x5b8] sm:$0xff]  ;;  %v163_v56 = vld [vmem:[%s3385_s1 + $0x430] sm:$0xff] }
  0x3b   :  { %1679 = vmatpush3.msra.mxu0 %v97_v57  ;;  %1712 = vmatpush3.msra.mxu1 %v130_v59  ;;  %v196_v57 = vld [vmem:[%s3385_s1 + $0x538] sm:$0xff]  ;;  %v211_v59 = vld [vmem:[%s3385_s1 + $0x5b0] sm:$0xff] }
  0x3c   :  { %1680 = vmatprep.subr.mxu0 %v112_v60  ;;  %1713 = vmatprep.subr.mxu1 %v145_v61  ;;  %v162_v60 = vld [vmem:[%s3385_s1 + $0x428] sm:$0xff]  ;;  %v195_v61 = vld [vmem:[%s3385_s1 + $0x530] sm:$0xff] }
  0x3d   :  { %1681 = vmatpush3.msra.mxu0 %v96_v62  ;;  %1714 = vmatpush3.msra.mxu1 %v129_v63  ;;  %v177_v62 = vld [vmem:[%s3385_s1 + $0x4a0] sm:$0xff]  ;;  %v210_v63 = vld [vmem:[%s3385_s1 + $0x5a8] sm:$0xff] }
  0x3e   :  { %1682 = vmatprep.subr.mxu0 %v111_v0  ;;  %1715 = vmatprep.subr.mxu1 %v144_v2  ;;  %v161_v0 = vld [vmem:[%s3385_s1 + $0x420] sm:$0xff]  ;;  %v194_v2 = vld [vmem:[%s3385_s1 + $0x528] sm:$0xff] }
  0x3f   :  { %1683 = vmatpush3.msra.mxu0 %v95_v3  ;;  %1716 = vmatpush3.msra.mxu1 %v128_v5  ;;  %v176_v3 = vld [vmem:[%s3385_s1 + $0x498] sm:$0xff] }
  0x40   :  { %1684 = vmatprep.subr.mxu0 %v110_v6  ;;  %1717 = vmatprep.subr.mxu1 %v143_v7  ;;  %v160_v5 = vld [vmem:[%s3385_s1 + $0x418] sm:$0xff]  ;;  %v193_v6 = vld [vmem:[%s3385_s1 + $0x520] sm:$0xff]  ;;  %v175_v7 = vld [vmem:[%s3385_s1 + $0x490] sm:$0xff] }
  0x41   :  { %1685 = vmatpush3.msra.mxu0 %v94_v8  ;;  %1718 = vmatpush3.msra.mxu1 %v127_v9  ;;  %v472_v8 = vcombine.high %v24_v1, %v24_v1  ;;  %v208_v9 = vld [vmem:[%s3385_s1 + $0x598] sm:$0xff] }
  0x42   :  { %1686 = vmatprep.subr.mxu0 %v109_v10  ;;  %1719 = vmatprep.subr.mxu1 %v142_v12  ;;  %v159_v10 = vld [vmem:[%s3385_s1 + $0x410] sm:$0xff]  ;;  %v192_v12 = vld [vmem:[%s3385_s1 + $0x518] sm:$0xff] }
  0x43   :  { %1687 = vmatpush3.msra.mxu0 %v93_v13  ;;  %776 = vmatprep.mubr.f32.mxu0 %v470_v14  ;;  %v174_v13 = vld [vmem:[%s3385_s1 + $0x488] sm:$0xff]  ;;  %v207_v14 = vld [vmem:[%s3385_s1 + $0x590] sm:$0xff] }
  0x44   :  { %1720 = vmatpush3.msra.mxu1 %v126_v15  ;;  %777 = vmatmul.mubr.f32.vlgmr.msra.gmra.mxu0 %v462_v4  ;;  %v209_v4 = vld [vmem:[%s3385_s1 + $0x5a0] sm:$0xff]  ;;  %v158_v15 = vld [vmem:[%s3385_s1 + $0x408] sm:$0xff] }
  0x45   :  { %1721 = vmatprep.subr.mxu1 %v141_v16  ;;  %1726 = vmatprep.subr.mxu0 %v188_v17  ;;  %v191_v16 = vld [vmem:[%s3385_s1 + $0x510] sm:$0xff]  ;;  %v173_v17 = vld [vmem:[%s3385_s1 + $0x480] sm:$0xff] }
  0x46   :  { %1722 = vmatpush3.msra.mxu1 %v125_v18  ;;  %846 = vmatprep.mubr.f32.mxu1 %v471_v19  ;;  %v486_v18 = vrot.slane %v472_v8, %v2263_v48  ;;  %v206_v19 = vld [vmem:[%s3385_s1 + $0x588] sm:$0xff]  ;;  %v25_v8 = vld [vmem:[%s3384_s0 + $0x18] sm:$0xff] }
  0x47   :  { %1727 = vmatpush3.msra.mxu0 %v172_v20  ;;  %847 = vmatmul.mubr.f32.vlgmr.msra.gmra.mxu1 %v469_v11  ;;  %v479_v11 = vrot.slane %v24_v1, %v2263_v48  ;;  %v157_v20 = vld [vmem:[%s3385_s1 + $0x400] sm:$0xff]  ;;  %v242_v1 = vld [vmem:[%s3385_s1 + $0x6a8] sm:$0xff] }
  0x48   :  { %1728 = vmatprep.subr.mxu0 %v187_v21  ;;  %1761 = vmatprep.subr.mxu1 %v220_v22  ;;  %v190_v22 = vld [vmem:[%s3385_s1 + $0x508] sm:$0xff] }
  0x49   :  { %1729 = vmatpush3.msra.mxu0 %v171_v23  ;;  %1762 = vmatpush3.msra.mxu1 %v204_v24  ;;  %v487_v21 = vcombine.high %v479_v11, %v479_v11  ;;  %v205_v23 = vld [vmem:[%s3385_s1 + $0x580] sm:$0xff]  ;;  %v252_v24 = vld [vmem:[%s3385_s1 + $0x6f8] sm:$0xff] }
  0x4a   :  { %1730 = vmatprep.subr.mxu0 %v186_v25  ;;  %1763 = vmatprep.subr.mxu1 %v219_v26  ;;  %v189_v25 = vld [vmem:[%s3385_s1 + $0x500] sm:$0xff]  ;;  %v488_v26 = vcombine.high %v486_v18, %v486_v18 }
  0x4b   :  { %1731 = vmatpush3.msra.mxu0 %v170_v27  ;;  %1764 = vmatpush3.msra.mxu1 %v203_v28  ;;  %v236_v27 = vld [vmem:[%s3385_s1 + $0x678] sm:$0xff]  ;;  %v251_v28 = vld [vmem:[%s3385_s1 + $0x6f0] sm:$0xff] }
  0x4c   :  { %1732 = vmatprep.subr.mxu0 %v185_v29  ;;  %1765 = vmatprep.subr.mxu1 %v218_v30  ;;  %v284_v29 = vld [vmem:[%s3385_s1 + $0x7f8] sm:$0xff]  ;;  %v235_v30 = vld [vmem:[%s3385_s1 + $0x670] sm:$0xff] }
  0x4d   :  { %1733 = vmatpush3.msra.mxu0 %v169_v31  ;;  %1766 = vmatpush3.msra.mxu1 %v202_v32  ;;  %v268_v31 = vld [vmem:[%s3385_s1 + $0x778] sm:$0xff]  ;;  %v250_v32 = vld [vmem:[%s3385_s1 + $0x6e8] sm:$0xff] }
  0x4e   :  { %1734 = vmatprep.subr.mxu0 %v184_v33  ;;  %1767 = vmatprep.subr.mxu1 %v217_v34  ;;  %v283_v33 = vld [vmem:[%s3385_s1 + $0x7f0] sm:$0xff]  ;;  %v234_v34 = vld [vmem:[%s3385_s1 + $0x668] sm:$0xff] }
  0x4f   :  { %1735 = vmatpush3.msra.mxu0 %v168_v35  ;;  %1768 = vmatpush3.msra.mxu1 %v201_v36  ;;  %v267_v35 = vld [vmem:[%s3385_s1 + $0x770] sm:$0xff]  ;;  %v249_v36 = vld [vmem:[%s3385_s1 + $0x6e0] sm:$0xff] }
  0x50   :  { %1736 = vmatprep.subr.mxu0 %v183_v37  ;;  %1769 = vmatprep.subr.mxu1 %v216_v38  ;;  %v282_v37 = vld [vmem:[%s3385_s1 + $0x7e8] sm:$0xff]  ;;  %v233_v38 = vld [vmem:[%s3385_s1 + $0x660] sm:$0xff] }
  0x51   :  { %1737 = vmatpush3.msra.mxu0 %v167_v39  ;;  %1770 = vmatpush3.msra.mxu1 %v200_v40  ;;  %v266_v39 = vld [vmem:[%s3385_s1 + $0x768] sm:$0xff]  ;;  %v248_v40 = vld [vmem:[%s3385_s1 + $0x6d8] sm:$0xff] }
  0x52   :  { %1738 = vmatprep.subr.mxu0 %v182_v41  ;;  %1771 = vmatprep.subr.mxu1 %v215_v42  ;;  %v281_v41 = vld [vmem:[%s3385_s1 + $0x7e0] sm:$0xff]  ;;  %v232_v42 = vld [vmem:[%s3385_s1 + $0x658] sm:$0xff] }
  0x53   :  { %1739 = vmatpush3.msra.mxu0 %v166_v43  ;;  %1772 = vmatpush3.msra.mxu1 %v199_v44  ;;  %v265_v43 = vld [vmem:[%s3385_s1 + $0x760] sm:$0xff]  ;;  %v247_v44 = vld [vmem:[%s3385_s1 + $0x6d0] sm:$0xff] }
  0x54   :  { %1740 = vmatprep.subr.mxu0 %v181_v45  ;;  %1773 = vmatprep.subr.mxu1 %v214_v46  ;;  %v280_v45 = vld [vmem:[%s3385_s1 + $0x7d8] sm:$0xff]  ;;  %v231_v46 = vld [vmem:[%s3385_s1 + $0x650] sm:$0xff] }
  0x55   :  { %1741 = vmatpush3.msra.mxu0 %v165_v47  ;;  %1774 = vmatpush3.msra.mxu1 %v198_v49  ;;  %v264_v47 = vld [vmem:[%s3385_s1 + $0x758] sm:$0xff]  ;;  %v246_v49 = vld [vmem:[%s3385_s1 + $0x6c8] sm:$0xff] }
  0x56   :  { %1742 = vmatprep.subr.mxu0 %v180_v50  ;;  %1775 = vmatprep.subr.mxu1 %v213_v51  ;;  %v279_v50 = vld [vmem:[%s3385_s1 + $0x7d0] sm:$0xff]  ;;  %v230_v51 = vld [vmem:[%s3385_s1 + $0x648] sm:$0xff] }
  0x57   :  { %1743 = vmatpush3.msra.mxu0 %v164_v52  ;;  %1776 = vmatpush3.msra.mxu1 %v197_v53  ;;  %v263_v52 = vld [vmem:[%s3385_s1 + $0x750] sm:$0xff]  ;;  %v245_v53 = vld [vmem:[%s3385_s1 + $0x6c0] sm:$0xff] }
  0x58   :  { %1744 = vmatprep.subr.mxu0 %v179_v54  ;;  %1777 = vmatprep.subr.mxu1 %v212_v55  ;;  %v278_v54 = vld [vmem:[%s3385_s1 + $0x7c8] sm:$0xff]  ;;  %v229_v55 = vld [vmem:[%s3385_s1 + $0x640] sm:$0xff] }
  0x59   :  { %1745 = vmatpush3.msra.mxu0 %v163_v56  ;;  %1778 = vmatpush3.msra.mxu1 %v196_v57  ;;  %v262_v56 = vld [vmem:[%s3385_s1 + $0x748] sm:$0xff]  ;;  %v244_v57 = vld [vmem:[%s3385_s1 + $0x6b8] sm:$0xff] }
  0x5a   :  { %1746 = vmatprep.subr.mxu0 %v178_v58  ;;  %1779 = vmatprep.subr.mxu1 %v211_v59  ;;  %v277_v58 = vld [vmem:[%s3385_s1 + $0x7c0] sm:$0xff]  ;;  %v228_v59 = vld [vmem:[%s3385_s1 + $0x638] sm:$0xff] }
  0x5b   :  { %1747 = vmatpush3.msra.mxu0 %v162_v60  ;;  %1780 = vmatpush3.msra.mxu1 %v195_v61  ;;  %v261_v60 = vld [vmem:[%s3385_s1 + $0x740] sm:$0xff]  ;;  %v243_v61 = vld [vmem:[%s3385_s1 + $0x6b0] sm:$0xff] }
  0x5c   :  { %1748 = vmatprep.subr.mxu0 %v177_v62  ;;  %1781 = vmatprep.subr.mxu1 %v210_v63  ;;  %v276_v62 = vld [vmem:[%s3385_s1 + $0x7b8] sm:$0xff]  ;;  %v227_v63 = vld [vmem:[%s3385_s1 + $0x630] sm:$0xff] }
  0x5d   :  { %1749 = vmatpush3.msra.mxu0 %v161_v0  ;;  %1782 = vmatpush3.msra.mxu1 %v194_v2  ;;  %v260_v0 = vld [vmem:[%s3385_s1 + $0x738] sm:$0xff]  ;;  %v275_v2 = vld [vmem:[%s3385_s1 + $0x7b0] sm:$0xff] }
  0x5e   :  { %1750 = vmatprep.subr.mxu0 %v176_v3  ;;  %1783 = vmatprep.subr.mxu1 %v209_v4  ;;  %v226_v3 = vld [vmem:[%s3385_s1 + $0x628] sm:$0xff]  ;;  %v259_v4 = vld [vmem:[%s3385_s1 + $0x730] sm:$0xff] }
  0x5f   :  { %1751 = vmatpush3.msra.mxu0 %v160_v5  ;;  %1784 = vmatpush3.msra.mxu1 %v193_v6  ;;  %v241_v5 = vld [vmem:[%s3385_s1 + $0x6a0] sm:$0xff]  ;;  %v274_v6 = vld [vmem:[%s3385_s1 + $0x7a8] sm:$0xff] }
  0x60   :  { %1752 = vmatprep.subr.mxu0 %v175_v7  ;;  %1785 = vmatprep.subr.mxu1 %v208_v9  ;;  %v225_v7 = vld [vmem:[%s3385_s1 + $0x620] sm:$0xff]  ;;  %v258_v9 = vld [vmem:[%s3385_s1 + $0x728] sm:$0xff] }
  0x61   :  { %1753 = vmatpush3.msra.mxu0 %v159_v10  ;;  %1786 = vmatpush3.msra.mxu1 %v192_v12  ;;  %v240_v10 = vld [vmem:[%s3385_s1 + $0x698] sm:$0xff] }
  0x62   :  { %1754 = vmatprep.subr.mxu0 %v174_v13  ;;  %1787 = vmatprep.subr.mxu1 %v207_v14  ;;  %v224_v12 = vld [vmem:[%s3385_s1 + $0x618] sm:$0xff]  ;;  %v257_v13 = vld [vmem:[%s3385_s1 + $0x720] sm:$0xff]  ;;  %v239_v14 = vld [vmem:[%s3385_s1 + $0x690] sm:$0xff] }
  0x63   :  { %1755 = vmatpush3.msra.mxu0 %v158_v15  ;;  %1788 = vmatpush3.msra.mxu1 %v191_v16  ;;  %v489_v15 = vcombine.high %v25_v8, %v25_v8  ;;  %v272_v16 = vld [vmem:[%s3385_s1 + $0x798] sm:$0xff] }
  0x64   :  { %1756 = vmatprep.subr.mxu0 %v173_v17  ;;  %1789 = vmatprep.subr.mxu1 %v206_v19  ;;  %v223_v17 = vld [vmem:[%s3385_s1 + $0x610] sm:$0xff]  ;;  %v256_v19 = vld [vmem:[%s3385_s1 + $0x718] sm:$0xff] }
  0x65   :  { %1757 = vmatpush3.msra.mxu0 %v157_v20  ;;  %916 = vmatprep.mubr.f32.mxu0 %v487_v21  ;;  %v238_v20 = vld [vmem:[%s3385_s1 + $0x688] sm:$0xff]  ;;  %v271_v21 = vld [vmem:[%s3385_s1 + $0x790] sm:$0xff] }
  0x66   :  { %1790 = vmatpush3.msra.mxu1 %v190_v22  ;;  %917 = vmatmul.mubr.f32.vlgmr.msra.gmra.mxu0 %v479_v11  ;;  %v273_v11 = vld [vmem:[%s3385_s1 + $0x7a0] sm:$0xff]  ;;  %v222_v22 = vld [vmem:[%s3385_s1 + $0x608] sm:$0xff] }
  0x67   :  { %1791 = vmatprep.subr.mxu1 %v205_v23  ;;  %1796 = vmatprep.subr.mxu0 %v252_v24  ;;  %v255_v23 = vld [vmem:[%s3385_s1 + $0x710] sm:$0xff]  ;;  %v237_v24 = vld [vmem:[%s3385_s1 + $0x680] sm:$0xff] }
  0x68   :  { %1792 = vmatpush3.msra.mxu1 %v189_v25  ;;  %986 = vmatprep.mubr.f32.mxu1 %v488_v26  ;;  %v503_v25 = vrot.slane %v489_v15, %v2263_v48  ;;  %v270_v26 = vld [vmem:[%s3385_s1 + $0x788] sm:$0xff] }
  0x69   :  { %1797 = vmatpush3.msra.mxu0 %v236_v27  ;;  %987 = vmatmul.mubr.f32.vlgmr.msra.gmra.mxu1 %v486_v18  ;;  %v496_v18 = vrot.slane %v25_v8, %v2263_v48  ;;  %v221_v27 = vld [vmem:[%s3385_s1 + $0x600] sm:$0xff] }
  0x6a   :  { %1798 = vmatprep.subr.mxu0 %v251_v28  ;;  %1831 = vmatprep.subr.mxu1 %v284_v29  ;;  %v254_v29 = vld [vmem:[%s3385_s1 + $0x708] sm:$0xff] }
  0x6b   :  { %1799 = vmatpush3.msra.mxu0 %v235_v30  ;;  %1832 = vmatpush3.msra.mxu1 %v268_v31  ;;  %v504_v28 = vcombine.high %v496_v18, %v496_v18  ;;  %v269_v30 = vld [vmem:[%s3385_s1 + $0x780] sm:$0xff]  ;;  %v316_v31 = vld [vmem:[%s3385_s1 + $0x8f8] sm:$0xff] }
  0x6c   :  { %1800 = vmatprep.subr.mxu0 %v250_v32  ;;  %1833 = vmatprep.subr.mxu1 %v283_v33  ;;  %v253_v32 = vld [vmem:[%s3385_s1 + $0x700] sm:$0xff]  ;;  %v505_v33 = vcombine.high %v503_v25, %v503_v25 }
  0x6d   :  { %1801 = vmatpush3.msra.mxu0 %v234_v34  ;;  %1834 = vmatpush3.msra.mxu1 %v267_v35  ;;  %v300_v34 = vld [vmem:[%s3385_s1 + $0x878] sm:$0xff]  ;;  %v315_v35 = vld [vmem:[%s3385_s1 + $0x8f0] sm:$0xff] }
  0x6e   :  { %1802 = vmatprep.subr.mxu0 %v249_v36  ;;  %1835 = vmatprep.subr.mxu1 %v282_v37  ;;  %v348_v36 = vld [vmem:[%s3385_s1 + $0x9f8] sm:$0xff]  ;;  %v299_v37 = vld [vmem:[%s3385_s1 + $0x870] sm:$0xff] }
  0x6f   :  { %1803 = vmatpush3.msra.mxu0 %v233_v38  ;;  %1836 = vmatpush3.msra.mxu1 %v266_v39 }
  0x70   :  { %1804 = vmatprep.subr.mxu0 %v248_v40  ;;  %1837 = vmatprep.subr.mxu1 %v281_v41 }
  0x71   :  { %1805 = vmatpush3.msra.mxu0 %v232_v42  ;;  %1838 = vmatpush3.msra.mxu1 %v265_v43 }
  0x72   :  { %1806 = vmatprep.subr.mxu0 %v247_v44  ;;  %1839 = vmatprep.subr.mxu1 %v280_v45 }
  0x73   :  { %1807 = vmatpush3.msra.mxu0 %v231_v46  ;;  %1840 = vmatpush3.msra.mxu1 %v264_v47 }
  0x74   :  { %1808 = vmatprep.subr.mxu0 %v246_v49  ;;  %1841 = vmatprep.subr.mxu1 %v279_v50 }
  0x75   :  { %1809 = vmatpush3.msra.mxu0 %v230_v51  ;;  %1842 = vmatpush3.msra.mxu1 %v263_v52 }
  0x76   :  { %1810 = vmatprep.subr.mxu0 %v245_v53  ;;  %1843 = vmatprep.subr.mxu1 %v278_v54 }
  0x77   :  { %1811 = vmatpush3.msra.mxu0 %v229_v55  ;;  %1844 = vmatpush3.msra.mxu1 %v262_v56 }
  0x78   :  { %1812 = vmatprep.subr.mxu0 %v244_v57  ;;  %1845 = vmatprep.subr.mxu1 %v277_v58 }
  0x79   :  { %1813 = vmatpush3.msra.mxu0 %v228_v59  ;;  %1846 = vmatpush3.msra.mxu1 %v261_v60 }
  0x7a   :  { %1814 = vmatprep.subr.mxu0 %v243_v61  ;;  %1847 = vmatprep.subr.mxu1 %v276_v62 }
  0x7b   :  { %1815 = vmatpush3.msra.mxu0 %v227_v63  ;;  %1848 = vmatpush3.msra.mxu1 %v260_v0 }
  0x7c   :  { %1816 = vmatprep.subr.mxu0 %v242_v1  ;;  %1849 = vmatprep.subr.mxu1 %v275_v2 }
  0x7d   :  { %1817 = vmatpush3.msra.mxu0 %v226_v3  ;;  %1850 = vmatpush3.msra.mxu1 %v259_v4 }
  0x7e   :  { %1818 = vmatprep.subr.mxu0 %v241_v5  ;;  %1851 = vmatprep.subr.mxu1 %v274_v6 }
  0x7f   :  { %1819 = vmatpush3.msra.mxu0 %v225_v7  ;;  %1852 = vmatpush3.msra.mxu1 %v258_v9 }
  0x80   :  { %1820 = vmatprep.subr.mxu0 %v240_v10  ;;  %1853 = vmatprep.subr.mxu1 %v273_v11 }
  0x81   :  { %1821 = vmatpush3.msra.mxu0 %v224_v12  ;;  %1854 = vmatpush3.msra.mxu1 %v257_v13 }
  0x82   :  { %1822 = vmatprep.subr.mxu0 %v239_v14  ;;  %1855 = vmatprep.subr.mxu1 %v272_v16 }
  0x83   :  { %1823 = vmatpush3.msra.mxu0 %v223_v17  ;;  %1856 = vmatpush3.msra.mxu1 %v256_v19 }
  0x84   :  { %1824 = vmatprep.subr.mxu0 %v238_v20  ;;  %1857 = vmatprep.subr.mxu1 %v271_v21 }
  0x85   :  { %1825 = vmatpush3.msra.mxu0 %v222_v22  ;;  %1858 = vmatpush3.msra.mxu1 %v255_v23 }
  0x86   :  { %1826 = vmatprep.subr.mxu0 %v237_v24  ;;  %1859 = vmatprep.subr.mxu1 %v270_v26 }
  0x87   :  { %1827 = vmatpush3.msra.mxu0 %v221_v27  ;;  %1056 = vmatprep.mubr.f32.mxu0 %v504_v28 }
  0x88   :  { %1860 = vmatpush3.msra.mxu1 %v254_v29  ;;  %1057 = vmatmul.mubr.f32.vlgmr.msra.gmra.mxu0 %v496_v18 }
  0x89   :  { %1861 = vmatprep.subr.mxu1 %v269_v30  ;;  %1866 = vmatprep.subr.mxu0 %v316_v31 }
  0x8a   :  { %1862 = vmatpush3.msra.mxu1 %v253_v32 }
  0x8b   :  { %11 = vsyncpa [#allocation4], 0  ;;  %1126 = vmatprep.mubr.f32.mxu1 %v505_v33  ;;  %1867 = vmatpush3.msra.mxu0 %v300_v34  ;;  %v332_v38 = vld [vmem:[%s3385_s1 + $0x978] sm:$0xff]  ;;  %v314_v39 = vld [vmem:[%s3385_s1 + $0x8e8] sm:$0xff]  ;;  %vm2102_vm0 = vmmov 0   ;;  %vm1492_vm1 = vcmask 130048  }
  0x8c   :  { %1127 = vmatmul.mubr.f32.vlgmr.msra.gmra.mxu1 %v503_v25  ;;  %1868 = vmatprep.subr.mxu0 %v315_v35  ;;  %v347_v40 = vld [vmem:[%s3385_s1 + $0x9f0] sm:$0xff]  ;;  %v298_v41 = vld [vmem:[%s3385_s1 + $0x868] sm:$0xff]  ;;  %v313_v43 = vld [vmem:[%s3385_s1 + $0x8e0] sm:$0xff]  ;;  %s2103_s11 = smov [#allocation3]   ;;  %vm1567_vm2 = vcmask 74752  }
  0x8d   :  { %1901 = vmatprep.subr.mxu1 %v348_v36  ;;  %1869 = vmatpush3.msra.mxu0 %v299_v37  ;;  %v331_v42 = vld [vmem:[%s3385_s1 + $0x970] sm:$0xff]  ;;  %v346_v44 = vld [vmem:[%s3385_s1 + $0x9e8] sm:$0xff]  ;;  %v297_v45 = vld [vmem:[%s3385_s1 + $0x860] sm:$0xff]  ;;  %s1575_s12 = sshll.u32 %s2103_s11, 4  ;;  %s1576_s12 = int_to_ptr.vmem [resolvable:$true] %s1575_s12 }
  0x8e   :  { %1902 = vmatpush3.msra.mxu1 %v332_v38  ;;  %1870 = vmatprep.subr.mxu0 %v314_v39  ;;  %v330_v46 = vld [vmem:[%s3385_s1 + $0x968] sm:$0xff]  ;;  %v312_v47 = vld [vmem:[%s3385_s1 + $0x8d8] sm:$0xff]  ;;  %v345_v49 = vld [vmem:[%s3385_s1 + $0x9e0] sm:$0xff]  ;;  %s2078_s13 = scalar_lea.vmem %s1576_s12, 32  ;;  %p2083_p1 = scmp.lt.s32.totalorder %s1576_s12, %s1576_s12 }
  0x8f   :  { %1903 = vmatprep.subr.mxu1 %v347_v40  ;;  %1871 = vmatpush3.msra.mxu0 %v298_v41  ;;  %v296_v50 = vld [vmem:[%s3385_s1 + $0x858] sm:$0xff]  ;;  %v329_v51 = vld [vmem:[%s3385_s1 + $0x960] sm:$0xff]  ;;  %v311_v52 = vld [vmem:[%s3385_s1 + $0x8d0] sm:$0xff]  ;;  %p2079_p0 = scmp.ne.s32.totalorder %s1576_s12, %s2078_s13  ;;  %p2084_p2 = scmp.lt.s32.totalorder %s2078_s13, %s2078_s13 }
  0x90   :  { %1904 = vmatpush3.msra.mxu1 %v331_v42  ;;  %1872 = vmatprep.subr.mxu0 %v313_v43  ;;  %v344_v53 = vld [vmem:[%s3385_s1 + $0x9d8] sm:$0xff]  ;;  %v295_v54 = vld [vmem:[%s3385_s1 + $0x850] sm:$0xff]  ;;  %v310_v56 = vld [vmem:[%s3385_s1 + $0x8c8] sm:$0xff] }
  0x91   :  { %1905 = vmatprep.subr.mxu1 %v346_v44  ;;  %1873 = vmatpush3.msra.mxu0 %v297_v45  ;;  %v328_v55 = vld [vmem:[%s3385_s1 + $0x958] sm:$0xff]  ;;  %v343_v57 = vld [vmem:[%s3385_s1 + $0x9d0] sm:$0xff]  ;;  %v294_v58 = vld [vmem:[%s3385_s1 + $0x848] sm:$0xff]  ;;  %p2085_p3 = por %p2084_p2, %p2083_p1 }
  0x92   :  { %1906 = vmatpush3.msra.mxu1 %v330_v46  ;;  %1874 = vmatprep.subr.mxu0 %v312_v47  ;;  %v327_v59 = vld [vmem:[%s3385_s1 + $0x950] sm:$0xff]  ;;  %v309_v60 = vld [vmem:[%s3385_s1 + $0x8c0] sm:$0xff]  ;;  %v342_v61 = vld [vmem:[%s3385_s1 + $0x9c8] sm:$0xff] }
  0x93   :  { %1907 = vmatprep.subr.mxu1 %v345_v49  ;;  %1875 = vmatpush3.msra.mxu0 %v296_v50  ;;  %v293_v62 = vld [vmem:[%s3385_s1 + $0x840] sm:$0xff]  ;;  %v326_v63 = vld [vmem:[%s3385_s1 + $0x948] sm:$0xff]  ;;  %v308_v0 = vld [vmem:[%s3385_s1 + $0x8b8] sm:$0xff]  ;;  %p2086_p4 = pnand %p2085_p3, %p2079_p0 }
  0x94   :  { %1908 = vmatpush3.msra.mxu1 %v329_v51  ;;  %1876 = vmatprep.subr.mxu0 %v311_v52  ;;  %v341_v1 = vld [vmem:[%s3385_s1 + $0x9c0] sm:$0xff]  ;;  %v292_v2 = vld [vmem:[%s3385_s1 + $0x838] sm:$0xff]  ;;  %v307_v4 = vld [vmem:[%s3385_s1 + $0x8b0] sm:$0xff] }
  0x95   :  { %1909 = vmatprep.subr.mxu1 %v344_v53  ;;  %1877 = vmatpush3.msra.mxu0 %v295_v54  ;;  %v325_v3 = vld [vmem:[%s3385_s1 + $0x940] sm:$0xff]  ;;  %v340_v5 = vld [vmem:[%s3385_s1 + $0x9b8] sm:$0xff]  ;;  %v291_v6 = vld [vmem:[%s3385_s1 + $0x830] sm:$0xff] }
  0x96   :  { %1910 = vmatpush3.msra.mxu1 %v328_v55  ;;  %1878 = vmatprep.subr.mxu0 %v310_v56  ;;  %v324_v7 = vld [vmem:[%s3385_s1 + $0x938] sm:$0xff]  ;;  %v306_v8 = vld [vmem:[%s3385_s1 + $0x8a8] sm:$0xff]  ;;  %v339_v9 = vld [vmem:[%s3385_s1 + $0x9b0] sm:$0xff] }
  0x97   :  { %1911 = vmatprep.subr.mxu1 %v343_v57  ;;  %1879 = vmatpush3.msra.mxu0 %v294_v58  ;;  %v290_v10 = vld [vmem:[%s3385_s1 + $0x828] sm:$0xff]  ;;  %v323_v11 = vld [vmem:[%s3385_s1 + $0x930] sm:$0xff]  ;;  %v305_v12 = vld [vmem:[%s3385_s1 + $0x8a0] sm:$0xff] }
  0x98   :  { %1912 = vmatpush3.msra.mxu1 %v327_v59  ;;  %1880 = vmatprep.subr.mxu0 %v309_v60  ;;  %v338_v13 = vld [vmem:[%s3385_s1 + $0x9a8] sm:$0xff]  ;;  %v289_v14 = vld [vmem:[%s3385_s1 + $0x820] sm:$0xff]  ;;  %v304_v17 = vld [vmem:[%s3385_s1 + $0x898] sm:$0xff] }
  0x99   :  { %1913 = vmatprep.subr.mxu1 %v342_v61  ;;  %1881 = vmatpush3.msra.mxu0 %v293_v62  ;;  %v26_v15 = vld [vmem:[%s3384_s0 + $0x20] sm:$0xff]  ;;  %v322_v16 = vld [vmem:[%s3385_s1 + $0x928] sm:$0xff]  ;;  %v288_v19 = vld [vmem:[%s3385_s1 + $0x818] sm:$0xff] }
  0x9a   :  { %1914 = vmatpush3.msra.mxu1 %v326_v63  ;;  %1882 = vmatprep.subr.mxu0 %v308_v0  ;;  %v337_v18 = vld [vmem:[%s3385_s1 + $0x9a0] sm:$0xff]  ;;  %v303_v21 = vld [vmem:[%s3385_s1 + $0x890] sm:$0xff]  ;;  %v506_v22 = vcombine.high %v26_v15, %v26_v15  ;;  %v336_v23 = vld [vmem:[%s3385_s1 + $0x998] sm:$0xff]  ;;  %v513_v25 = vrot.slane %v26_v15, %v2263_v48 }
  0x9b   :  { %1915 = vmatprep.subr.mxu1 %v341_v1  ;;  %1883 = vmatpush3.msra.mxu0 %v292_v2  ;;  %v321_v20 = vld [vmem:[%s3385_s1 + $0x920] sm:$0xff]  ;;  %v287_v24 = vld [vmem:[%s3385_s1 + $0x810] sm:$0xff]  ;;  %v320_v26 = vld [vmem:[%s3385_s1 + $0x918] sm:$0xff] }
  0x9c   :  { %1916 = vmatpush3.msra.mxu1 %v325_v3  ;;  %1884 = vmatprep.subr.mxu0 %v307_v4  ;;  %v302_v27 = vld [vmem:[%s3385_s1 + $0x888] sm:$0xff]  ;;  %v335_v28 = vld [vmem:[%s3385_s1 + $0x990] sm:$0xff]  ;;  %v301_v31 = vld [vmem:[%s3385_s1 + $0x880] sm:$0xff]  ;;  %v520_v32 = vrot.slane %v506_v22, %v2263_v48  ;;  %v521_v35 = vcombine.high %v513_v25, %v513_v25 }
  0x9d   :  { %1917 = vmatprep.subr.mxu1 %v340_v5  ;;  %1885 = vmatpush3.msra.mxu0 %v291_v6  ;;  %v286_v29 = vld [vmem:[%s3385_s1 + $0x808] sm:$0xff]  ;;  %v319_v30 = vld [vmem:[%s3385_s1 + $0x910] sm:$0xff]  ;;  %v285_v34 = vld [vmem:[%s3385_s1 + $0x800] sm:$0xff] }
  0x9e   :  { %1918 = vmatpush3.msra.mxu1 %v324_v7  ;;  %1886 = vmatprep.subr.mxu0 %v306_v8  ;;  %v334_v33 = vld [vmem:[%s3385_s1 + $0x988] sm:$0xff]  ;;  %v333_v37 = vld [vmem:[%s3385_s1 + $0x980] sm:$0xff]  ;;  %v380_v38 = vld [vmem:[%s3385_s1 + $0xaf8] sm:$0xff]  ;;  %v522_v40 = vcombine.high %v520_v32, %v520_v32 }
  0x9f   :  { %1919 = vmatprep.subr.mxu1 %v339_v9  ;;  %1887 = vmatpush3.msra.mxu0 %v290_v10  ;;  %v318_v36 = vld [vmem:[%s3385_s1 + $0x908] sm:$0xff]  ;;  %v317_v39 = vld [vmem:[%s3385_s1 + $0x900] sm:$0xff]  ;;  %v364_v41 = vld [vmem:[%s3385_s1 + $0xa78] sm:$0xff] }
  0xa0   :  { %1920 = vmatpush3.msra.mxu1 %v323_v11  ;;  %1888 = vmatprep.subr.mxu0 %v305_v12  ;;  %v379_v42 = vld [vmem:[%s3385_s1 + $0xaf0] sm:$0xff]  ;;  %v412_v43 = vld [vmem:[%s3385_s1 + $0xbf8] sm:$0xff]  ;;  %v378_v46 = vld [vmem:[%s3385_s1 + $0xae8] sm:$0xff] }
  0xa1   :  { %1921 = vmatprep.subr.mxu1 %v338_v13  ;;  %1889 = vmatpush3.msra.mxu0 %v289_v14  ;;  %v363_v44 = vld [vmem:[%s3385_s1 + $0xa70] sm:$0xff]  ;;  %v396_v45 = vld [vmem:[%s3385_s1 + $0xb78] sm:$0xff]  ;;  %v362_v49 = vld [vmem:[%s3385_s1 + $0xa68] sm:$0xff] }
  0xa2   :  { %1922 = vmatpush3.msra.mxu1 %v322_v16  ;;  %1890 = vmatprep.subr.mxu0 %v304_v17  ;;  %v411_v47 = vld [vmem:[%s3385_s1 + $0xbf0] sm:$0xff]  ;;  %v377_v51 = vld [vmem:[%s3385_s1 + $0xae0] sm:$0xff]  ;;  %v410_v52 = vld [vmem:[%s3385_s1 + $0xbe8] sm:$0xff] }
  0xa3   :  { %1923 = vmatprep.subr.mxu1 %v337_v18  ;;  %1891 = vmatpush3.msra.mxu0 %v288_v19  ;;  %v395_v50 = vld [vmem:[%s3385_s1 + $0xb70] sm:$0xff]  ;;  %v361_v53 = vld [vmem:[%s3385_s1 + $0xa60] sm:$0xff]  ;;  %v394_v54 = vld [vmem:[%s3385_s1 + $0xb68] sm:$0xff] }
  0xa4   :  { %1924 = vmatpush3.msra.mxu1 %v321_v20  ;;  %1892 = vmatprep.subr.mxu0 %v303_v21  ;;  %v376_v55 = vld [vmem:[%s3385_s1 + $0xad8] sm:$0xff]  ;;  %v409_v56 = vld [vmem:[%s3385_s1 + $0xbe0] sm:$0xff]  ;;  %v375_v59 = vld [vmem:[%s3385_s1 + $0xad0] sm:$0xff] }
  0xa5   :  { %1925 = vmatprep.subr.mxu1 %v336_v23  ;;  %1893 = vmatpush3.msra.mxu0 %v287_v24  ;;  %v360_v57 = vld [vmem:[%s3385_s1 + $0xa58] sm:$0xff]  ;;  %v393_v58 = vld [vmem:[%s3385_s1 + $0xb60] sm:$0xff]  ;;  %v359_v61 = vld [vmem:[%s3385_s1 + $0xa50] sm:$0xff] }
  0xa6   :  { %1926 = vmatpush3.msra.mxu1 %v320_v26  ;;  %1894 = vmatprep.subr.mxu0 %v302_v27  ;;  %v408_v60 = vld [vmem:[%s3385_s1 + $0xbd8] sm:$0xff]  ;;  %v374_v63 = vld [vmem:[%s3385_s1 + $0xac8] sm:$0xff]  ;;  %v407_v0 = vld [vmem:[%s3385_s1 + $0xbd0] sm:$0xff] }
  0xa7   :  { %1927 = vmatprep.subr.mxu1 %v335_v28  ;;  %1895 = vmatpush3.msra.mxu0 %v286_v29  ;;  %v392_v62 = vld [vmem:[%s3385_s1 + $0xb58] sm:$0xff]  ;;  %v358_v1 = vld [vmem:[%s3385_s1 + $0xa48] sm:$0xff]  ;;  %v391_v2 = vld [vmem:[%s3385_s1 + $0xb50] sm:$0xff] }
  0xa8   :  { %1928 = vmatpush3.msra.mxu1 %v319_v30  ;;  %1896 = vmatprep.subr.mxu0 %v301_v31  ;;  %v373_v3 = vld [vmem:[%s3385_s1 + $0xac0] sm:$0xff]  ;;  %v406_v4 = vld [vmem:[%s3385_s1 + $0xbc8] sm:$0xff]  ;;  %v372_v7 = vld [vmem:[%s3385_s1 + $0xab8] sm:$0xff] }
  0xa9   :  { %1929 = vmatprep.subr.mxu1 %v334_v33  ;;  %1897 = vmatpush3.msra.mxu0 %v285_v34  ;;  %v357_v5 = vld [vmem:[%s3385_s1 + $0xa40] sm:$0xff]  ;;  %v390_v6 = vld [vmem:[%s3385_s1 + $0xb48] sm:$0xff]  ;;  %v356_v9 = vld [vmem:[%s3385_s1 + $0xa38] sm:$0xff] }
  0xaa   :  { %1196 = vmatprep.mubr.f32.mxu0 %v521_v35  ;;  %1930 = vmatpush3.msra.mxu1 %v318_v36  ;;  %v405_v8 = vld [vmem:[%s3385_s1 + $0xbc0] sm:$0xff]  ;;  %v371_v11 = vld [vmem:[%s3385_s1 + $0xab0] sm:$0xff]  ;;  %v404_v12 = vld [vmem:[%s3385_s1 + $0xbb8] sm:$0xff] }
  0xab   :  { %1197 = vmatmul.mubr.f32.vlgmr.msra.gmra.mxu0 %v513_v25  ;;  %1931 = vmatprep.subr.mxu1 %v333_v37  ;;  %v389_v10 = vld [vmem:[%s3385_s1 + $0xb40] sm:$0xff]  ;;  %v355_v13 = vld [vmem:[%s3385_s1 + $0xa30] sm:$0xff]  ;;  %v388_v14 = vld [vmem:[%s3385_s1 + $0xb38] sm:$0xff] }
  0xac   :  { %1936 = vmatprep.subr.mxu0 %v380_v38  ;;  %1932 = vmatpush3.msra.mxu1 %v317_v39  ;;  %v370_v15 = vld [vmem:[%s3385_s1 + $0xaa8] sm:$0xff]  ;;  %v403_v16 = vld [vmem:[%s3385_s1 + $0xbb0] sm:$0xff]  ;;  %v369_v19 = vld [vmem:[%s3385_s1 + $0xaa0] sm:$0xff] }
  0xad   :  { %1266 = vmatprep.mubr.f32.mxu1 %v522_v40  ;;  %1937 = vmatpush3.msra.mxu0 %v364_v41  ;;  %v354_v17 = vld [vmem:[%s3385_s1 + $0xa28] sm:$0xff]  ;;  %v387_v18 = vld [vmem:[%s3385_s1 + $0xb30] sm:$0xff]  ;;  %v353_v21 = vld [vmem:[%s3385_s1 + $0xa20] sm:$0xff] }
  0xae   :  { %1267 = vmatmul.mubr.f32.vlgmr.msra.gmra.mxu1 %v520_v32  ;;  %1938 = vmatprep.subr.mxu0 %v379_v42  ;;  %v402_v20 = vld [vmem:[%s3385_s1 + $0xba8] sm:$0xff]  ;;  %v368_v24 = vld [vmem:[%s3385_s1 + $0xa98] sm:$0xff]  ;;  %v401_v25 = vld [vmem:[%s3385_s1 + $0xba0] sm:$0xff] }
  0xaf   :  { %1971 = vmatprep.subr.mxu1 %v412_v43  ;;  %1939 = vmatpush3.msra.mxu0 %v363_v44  ;;  %v27_v22 = vld [vmem:[%s3384_s0 + $0x28] sm:$0xff]  ;;  %v352_v26 = vld [vmem:[%s3385_s1 + $0xa18] sm:$0xff]  ;;  %v385_v27 = vld [vmem:[%s3385_s1 + $0xb20] sm:$0xff] }
  0xb0   :  { %1972 = vmatpush3.msra.mxu1 %v396_v45  ;;  %1940 = vmatprep.subr.mxu0 %v378_v46  ;;  %v386_v23 = vld [vmem:[%s3385_s1 + $0xb28] sm:$0xff]  ;;  %v367_v28 = vld [vmem:[%s3385_s1 + $0xa90] sm:$0xff]  ;;  %v523_v29 = vcombine.high %v27_v22, %v27_v22  ;;  %v400_v30 = vld [vmem:[%s3385_s1 + $0xb98] sm:$0xff]  ;;  %v530_v32 = vrot.slane %v27_v22, %v2263_v48 }
  0xb1   :  { %1973 = vmatprep.subr.mxu1 %v411_v47  ;;  %1941 = vmatpush3.msra.mxu0 %v362_v49  ;;  %v351_v31 = vld [vmem:[%s3385_s1 + $0xa10] sm:$0xff]  ;;  %v384_v33 = vld [vmem:[%s3385_s1 + $0xb18] sm:$0xff]  ;;  %v366_v34 = vld [vmem:[%s3385_s1 + $0xa88] sm:$0xff]  ;;  %v2101_v47 = vmov 0.0  }
  0xb2   :  { %1974 = vmatpush3.msra.mxu1 %v395_v50  ;;  %1942 = vmatprep.subr.mxu0 %v377_v51  ;;  %v399_v35 = vld [vmem:[%s3385_s1 + $0xb90] sm:$0xff]  ;;  %v350_v36 = vld [vmem:[%s3385_s1 + $0xa08] sm:$0xff]  ;;  %v365_v38 = vld [vmem:[%s3385_s1 + $0xa80] sm:$0xff]  ;;  %v537_v39 = vrot.slane %v523_v29, %v2263_v48  ;;  %v538_v42 = vcombine.high %v530_v32, %v530_v32 }
  0xb3   :  { %1975 = vmatprep.subr.mxu1 %v410_v52  ;;  %1943 = vmatpush3.msra.mxu0 %v361_v53  ;;  %v383_v37 = vld [vmem:[%s3385_s1 + $0xb10] sm:$0xff]  ;;  %v398_v40 = vld [vmem:[%s3385_s1 + $0xb88] sm:$0xff]  ;;  %v349_v41 = vld [vmem:[%s3385_s1 + $0xa00] sm:$0xff] }
  0xb4   :  { %1976 = vmatpush3.msra.mxu1 %v394_v54  ;;  %1944 = vmatprep.subr.mxu0 %v376_v55  ;;  %v382_v43 = vld [vmem:[%s3385_s1 + $0xb08] sm:$0xff]  ;;  %v397_v48 = vld [vmem:[%s3385_s1 + $0xb80] sm:$0xff]  ;;  %v539_v45 = vcombine.high %v537_v39, %v537_v39  ;;  %v428_v46 = vld [vmem:[%s3385_s1 + $0xc78] sm:$0xff] }
  0xb5   :  { %1977 = vmatprep.subr.mxu1 %v409_v56  ;;  %1945 = vmatpush3.msra.mxu0 %v360_v57  ;;  %v381_v44 = vld [vmem:[%s3385_s1 + $0xb00] sm:$0xff]  ;;  %v427_v49 = vld [vmem:[%s3385_s1 + $0xc70] sm:$0xff]  ;;  %v426_v50 = vld [vmem:[%s3385_s1 + $0xc68] sm:$0xff] }
  0xb6   :  { %1978 = vmatpush3.msra.mxu1 %v393_v58  ;;  %1946 = vmatprep.subr.mxu0 %v375_v59  ;;  %v425_v51 = vld [vmem:[%s3385_s1 + $0xc60] sm:$0xff]  ;;  %v424_v52 = vld [vmem:[%s3385_s1 + $0xc58] sm:$0xff]  ;;  %v423_v53 = vld [vmem:[%s3385_s1 + $0xc50] sm:$0xff] }
  0xb7   :  { %1979 = vmatprep.subr.mxu1 %v408_v60  ;;  %1947 = vmatpush3.msra.mxu0 %v359_v61  ;;  %v422_v54 = vld [vmem:[%s3385_s1 + $0xc48] sm:$0xff]  ;;  %v421_v55 = vld [vmem:[%s3385_s1 + $0xc40] sm:$0xff]  ;;  %v420_v56 = vld [vmem:[%s3385_s1 + $0xc38] sm:$0xff] }
  0xb8   :  { %1980 = vmatpush3.msra.mxu1 %v392_v62  ;;  %1948 = vmatprep.subr.mxu0 %v374_v63  ;;  %v419_v57 = vld [vmem:[%s3385_s1 + $0xc30] sm:$0xff]  ;;  %v418_v58 = vld [vmem:[%s3385_s1 + $0xc28] sm:$0xff]  ;;  %v417_v59 = vld [vmem:[%s3385_s1 + $0xc20] sm:$0xff] }
  0xb9   :  { %1981 = vmatprep.subr.mxu1 %v407_v0  ;;  %1949 = vmatpush3.msra.mxu0 %v358_v1  ;;  %v416_v60 = vld [vmem:[%s3385_s1 + $0xc18] sm:$0xff]  ;;  %v415_v61 = vld [vmem:[%s3385_s1 + $0xc10] sm:$0xff]  ;;  %v414_v62 = vld [vmem:[%s3385_s1 + $0xc08] sm:$0xff] }
  0xba   :  { %1982 = vmatpush3.msra.mxu1 %v391_v2  ;;  %1950 = vmatprep.subr.mxu0 %v373_v3  ;;  %v413_v63 = vld [vmem:[%s3385_s1 + $0xc00] sm:$0xff]  ;;  %v1583_v0 = vld.sshfl [vmem:[%s3384_s0 + $0x30] sm:$0x3 pattern:$0x76325410]  ;;  %v1484_v1 = vld [vmem:[%s3387_s3 + $0x8] sm:$0xff] }
  0xbb   :  { %1983 = vmatprep.subr.mxu1 %v406_v4  ;;  %1951 = vmatpush3.msra.mxu0 %v357_v5  ;;  %v1483_v2 = vld [vmem:[%s3387_s3] sm:$0xff] }
  0xbc   :  { %1984 = vmatpush3.msra.mxu1 %v390_v6  ;;  %1952 = vmatprep.subr.mxu0 %v372_v7 }
  0xbd   :  { %1985 = vmatprep.subr.mxu1 %v405_v8  ;;  %1953 = vmatpush3.msra.mxu0 %v356_v9  ;;  %v430_v8 = vstv %s3386_s2 }
  0xbe   :  { %1986 = vmatpush3.msra.mxu1 %v389_v10  ;;  %1954 = vmatprep.subr.mxu0 %v371_v11 }
  0xbf   :  { %1987 = vmatprep.subr.mxu1 %v404_v12  ;;  %1955 = vmatpush3.msra.mxu0 %v355_v13 }
  0xc0   :  { %1988 = vmatpush3.msra.mxu1 %v388_v14  ;;  %1956 = vmatprep.subr.mxu0 %v370_v15 }
  0xc1   :  { %1989 = vmatprep.subr.mxu1 %v403_v16  ;;  %1957 = vmatpush3.msra.mxu0 %v354_v17 }
  0xc2   :  { %1990 = vmatpush3.msra.mxu1 %v387_v18  ;;  %1958 = vmatprep.subr.mxu0 %v369_v19 }
  0xc3   :  { %1991 = vmatprep.subr.mxu1 %v402_v20  ;;  %1959 = vmatpush3.msra.mxu0 %v353_v21 }
  0xc4   :  { %1992 = vmatpush3.msra.mxu1 %v386_v23  ;;  %1960 = vmatprep.subr.mxu0 %v368_v24 }
  0xc5   :  { %1993 = vmatprep.subr.mxu1 %v401_v25  ;;  %1961 = vmatpush3.msra.mxu0 %v352_v26 }
  0xc6   :  { %1994 = vmatpush3.msra.mxu1 %v385_v27  ;;  %1962 = vmatprep.subr.mxu0 %v367_v28 }
  0xc7   :  { %1995 = vmatprep.subr.mxu1 %v400_v30  ;;  %1963 = vmatpush3.msra.mxu0 %v351_v31 }
  0xc8   :  { %1996 = vmatpush3.msra.mxu1 %v384_v33  ;;  %1964 = vmatprep.subr.mxu0 %v366_v34 }
  0xc9   :  { %1997 = vmatprep.subr.mxu1 %v399_v35  ;;  %1965 = vmatpush3.msra.mxu0 %v350_v36 }
  0xca   :  { %1998 = vmatpush3.msra.mxu1 %v383_v37  ;;  %1966 = vmatprep.subr.mxu0 %v365_v38 }
  0xcb   :  { %1999 = vmatprep.subr.mxu1 %v398_v40  ;;  %1967 = vmatpush3.msra.mxu0 %v349_v41 }
  0xcc   :  { %1336 = vmatprep.mubr.f32.mxu0 %v538_v42  ;;  %2000 = vmatpush3.msra.mxu1 %v382_v43 }
  0xcd   :  { %1337 = vmatmul.mubr.f32.vlgmr.msra.gmra.mxu0 %v530_v32  ;;  %2001 = vmatprep.subr.mxu1 %v397_v48 }
  0xce   :  { %2026 = vmatprep.subr.mxu0 %v2101_v47  ;;  %2002 = vmatpush3.msra.mxu1 %v381_v44 }
  0xcf   :  { %1406 = vmatprep.mubr.f32.mxu1 %v539_v45  ;;  %2027 = vmatpush3.msra.mxu0 %v428_v46 }
  0xd0   :  { %1407 = vmatmul.mubr.f32.vlgmr.msra.gmra.mxu1 %v537_v39  ;;  %2028 = vmatprep.subr.mxu0 %v2101_v47 }
  0xd1   :  { %2029 = vmatpush3.msra.mxu0 %v427_v49  ;;  %2058 = vmatprep.mubr.msk.f32.mxu0 %vm2102_vm0, %v2101_v47 }
  0xd2   :  { %2030 = vmatprep.subr.mxu0 %v2101_v47  ;;  %2061 = vmatprep.subr.mxu1 %v2101_v47 }
  0xd3   :  { %2031 = vmatpush3.msra.mxu0 %v426_v50  ;;  %2065 = vmatprep.mubr.msk.f32.mxu1 %vm2102_vm0, %v2101_v47 }
  0xd4   :  { %2032 = vmatprep.subr.mxu0 %v2101_v47  ;;  %2062 = vmatpush3.msra.mxu1 %v1484_v1 }
  0xd5   :  { %2033 = vmatpush3.msra.mxu0 %v425_v51  ;;  %2063 = vmatprep.subr.mxu1 %v2101_v47 }
  0xd6   :  { %2034 = vmatprep.subr.mxu0 %v2101_v47  ;;  %2064 = vmatpush3.msra.mxu1 %v1483_v2 }
  0xd7   :  { %2035 = vmatpush3.msra.mxu0 %v424_v52 }
  0xd8   :  { %2036 = vmatprep.subr.mxu0 %v2101_v47 }
  0xd9   :  { %2037 = vmatpush3.msra.mxu0 %v423_v53 }
  0xda   :  { %2038 = vmatprep.subr.mxu0 %v2101_v47 }
  0xdb   :  { %2039 = vmatpush3.msra.mxu0 %v422_v54 }
  0xdc   :  { %2040 = vmatprep.subr.mxu0 %v2101_v47 }
  0xdd   :  { %2041 = vmatpush3.msra.mxu0 %v421_v55 }
  0xde   :  { %2042 = vmatprep.subr.mxu0 %v2101_v47 }
  0xdf   :  { %2043 = vmatpush3.msra.mxu0 %v420_v56  ;;  %v1584_v56 = vld [vmem:[%s3388_s4] ss:$0 sm:$0xff] }
  0xe0   :  { %2044 = vmatprep.subr.mxu0 %v2101_v47 }
  0xe1   :  { %2045 = vmatpush3.msra.mxu0 %v419_v57 }
  0xe2   :  { %2046 = vmatprep.subr.mxu0 %v2101_v47  ;;  %v1618_v3 = vpop.f32.mrf.mxu0 }
  0xe3   :  { %2047 = vmatpush3.msra.mxu0 %v418_v58 }
  0xe4   :  { %2048 = vmatprep.subr.mxu0 %v2101_v47  ;;  %v1619_v4 = vpop.f32.mrf.mxu0 }
  0xe5   :  { %2049 = vmatpush3.msra.mxu0 %v417_v59  ;;  %v1653_v5 = vpop.f32.mrf.mxu1  ;;  %v1620_v7 = vadd.f32 %v1619_v4, %v1618_v3 }
  0xe6   :  { %2050 = vmatprep.subr.mxu0 %v2101_v47 }
  0xe7   :  { %2051 = vmatpush3.msra.mxu0 %v416_v60  ;;  %v1654_v9 = vpop.f32.mrf.mxu1  ;;  %v639_v12 = vadd.f32 %v1620_v7, %v430_v8 }
  0xe8   :  { %2052 = vmatprep.subr.mxu0 %v2101_v47  ;;  %v1655_v13 = vadd.f32 %v1654_v9, %v1653_v5 }
  0xe9   :  { %2053 = vmatpush3.msra.mxu0 %v415_v61 }
  0xea   :  { %2054 = vmatprep.subr.mxu0 %v2101_v47  ;;  %v709_v17 = vadd.f32 %v1655_v13, %v639_v12 }
  0xeb   :  { %2055 = vmatpush3.msra.mxu0 %v414_v62 }
  0xec   :  { %2056 = vmatprep.subr.mxu0 %v2101_v47 }
  0xed   :  { %2057 = vmatpush3.msra.mxu0 %v413_v63 }
  0xee   :  { %2059 = vmatmul.mubr.f32.vlgmr.msra.gmra.mxu0 %v1583_v0 }
 0x104   :  { %v1688_v6 = vpop.f32.mrf.mxu0 }
 0x106   :  { %v1689_v10 = vpop.f32.mrf.mxu0 }
 0x107   :  { %v1723_v11 = vpop.f32.mrf.mxu1  ;;  %v1690_v15 = vadd.f32 %v1689_v10, %v1688_v6 }
 0x109   :  { %v1724_v16 = vpop.f32.mrf.mxu1  ;;  %v779_v20 = vadd.f32 %v1690_v15, %v709_v17 }
 0x10a   :  { %v1725_v21 = vadd.f32 %v1724_v16, %v1723_v11 }
 0x10c   :  { %v849_v25 = vadd.f32 %v1725_v21, %v779_v20 }
 0x126   :  { %v1758_v14 = vpop.f32.mrf.mxu0 }
 0x128   :  { %v1759_v18 = vpop.f32.mrf.mxu0 }
 0x129   :  { %v1793_v19 = vpop.f32.mrf.mxu1  ;;  %v1760_v23 = vadd.f32 %v1759_v18, %v1758_v14 }
 0x12b   :  { %v1794_v24 = vpop.f32.mrf.mxu1  ;;  %v919_v28 = vadd.f32 %v1760_v23, %v849_v25 }
 0x12c   :  { %v1795_v29 = vadd.f32 %v1794_v24, %v1793_v19 }
 0x12e   :  { %v989_v33 = vadd.f32 %v1795_v29, %v919_v28 }
 0x148   :  { %v1828_v22 = vpop.f32.mrf.mxu0 }
 0x14a   :  { %v1829_v26 = vpop.f32.mrf.mxu0 }
 0x14b   :  { %v1830_v31 = vadd.f32 %v1829_v26, %v1828_v22 }
 0x14c   :  { %v1863_v27 = vpop.f32.mrf.mxu1 }
 0x14d   :  { %v1059_v36 = vadd.f32 %v1830_v31, %v989_v33 }
 0x14e   :  { %v1864_v32 = vpop.f32.mrf.mxu1 }
 0x14f   :  { %v1865_v37 = vadd.f32 %v1864_v32, %v1863_v27 }
 0x151   :  { %v1129_v41 = vadd.f32 %v1865_v37, %v1059_v36 }
 0x16b   :  { %v1898_v30 = vpop.f32.mrf.mxu0 }
 0x16d   :  { %v1899_v34 = vpop.f32.mrf.mxu0 }
 0x16e   :  { %v1933_v35 = vpop.f32.mrf.mxu1  ;;  %v1900_v39 = vadd.f32 %v1899_v34, %v1898_v30 }
 0x170   :  { %v1934_v40 = vpop.f32.mrf.mxu1  ;;  %v1199_v48 = vadd.f32 %v1900_v39, %v1129_v41 }
 0x171   :  { %v1935_v44 = vadd.f32 %v1934_v40, %v1933_v35 }
 0x173   :  { %v1269_v47 = vadd.f32 %v1935_v44, %v1199_v48 }
 0x18d   :  { %v1968_v38 = vpop.f32.mrf.mxu0 }
 0x18f   :  { %v1969_v42 = vpop.f32.mrf.mxu0 }
 0x190   :  { %v2003_v43 = vpop.f32.mrf.mxu1  ;;  %v1970_v45 = vadd.f32 %v1969_v42, %v1968_v38 }
 0x192   :  { %v2004_v46 = vpop.f32.mrf.mxu1  ;;  %v1339_v49 = vadd.f32 %v1970_v45, %v1269_v47 }
 0x193   :  { %v2005_v50 = vadd.f32 %v2004_v46, %v2003_v43 }
 0x195   :  { %v1409_v51 = vadd.f32 %v2005_v50, %v1339_v49 }
 0x1ae   :  { %v1478_v52 = vpop.f32.mrf.mxu0 }
 0x1af   :  { %v1479_v53 = vadd.f32 %v1478_v52, %v1409_v51 }
 0x1b0   :  { %v2060_v54 = vpop.f32.mrf.mxu0 }
 0x1b1   :  { %v1482_v55 = vmax.f32 %v1479_v53, 0.0 }
 0x1b3   :  { %2066 = vmatmul.mubr.msk.f32.vlgmr.msra.gmra.mxu1 %vm1492_vm1, %v1482_v55 }
 0x273   :  { %v1562_v57 = vpop.f32.mrf.mxu1 }
 0x274   :  { %v1563_v58 = vadd.f32 %v1584_v56, %v1562_v57 }
 0x275   :  { %v2067_v59 = vpop.f32.mrf.mxu1 }
 0x276   :  { %v1566_v60 = vmax.f32 %v1563_v58, 0.0 }
 0x278   :  { %1568 = vst.msk [vmem:[#allocation3] sm:$0x3] %vm1567_vm2, %v1566_v60 }
 0x279   :  { %2089 = shalt.err (!%p2086_p4)
}
 0x27a   :  { %1578 = dma.vmem_to_hbm [thread:$0]  %s1576_s12, 32, %s3389_s5, [#allocation4]  }
 0x27b   :  { %2098 = dma.done.wait [#allocation4], 32  }
 0x27c   :  { %2099 = vsyncadd [#allocation4], 4294967264 }
 0x27d   :  { %1582 = vsyncpa [#allocation4], 1 }

</bundles_post_ra>
